<compile_context>
chip_gen: v7x
topology: tpu7x:2x2x1
jax: 0.10.0
libtpu: 0.0.40
codegen_flags: <defaults>
</compile_context>

<pallas_src>
import functools

import jax
import jax.numpy as jnp
from jax import lax
from jax.experimental import pallas as pl
from jax.experimental.pallas import tpu as pltpu  # noqa: F401  (TPU backend)


# ----------------------------- Pallas kernel ------------------------------ #
def basic_lstm_kernel(g0pre_ref,                   # (T, B, 4H): precomputed layer-0 terms
                      whh0_ref,                    # (H, 4H)
                      wfb_ref,                     # (H, 4H) = Wout @ Wih0[2:, :]
                      wih1_ref, whh1_ref, b1_ref,  # layer-1 LSTM weights
                      wout_ref, bout_ref,          # (H, O), (1, O) linear head
                      out_ref):                    # (T, B, O)
    T, B, G = g0pre_ref.shape
    H = whh0_ref.shape[0]
    O = wout_ref.shape[1]

    # Hoist weight loads and bias broadcasts out of the time loop
    # (JAX does not CSE broadcast_in_dim inside the unrolled loop).
    whh0 = whh0_ref[...]
    wfb = wfb_ref[...]
    wih1 = wih1_ref[...]
    whh1 = whh1_ref[...]
    wout = wout_ref[...]
    b1 = jnp.broadcast_to(b1_ref[...], (B, G))
    bout = jnp.broadcast_to(bout_ref[...], (B, O))

    def mm(a, b):
        return jnp.dot(a, b, preferred_element_type=jnp.float32)

    def cell(gates, c):
        # packed gate order is (i, f, o, g): one sigmoid over the contiguous
        # leading 3H lanes + one tanh over the trailing H lanes.
        sig = jax.nn.sigmoid(gates[:, :3 * H])
        g = jnp.tanh(gates[:, 3 * H:])
        i = sig[:, 0 * H:1 * H]
        f = sig[:, 1 * H:2 * H]
        o = sig[:, 2 * H:3 * H]
        c_new = i * g if c is None else f * c + i * g   # c is None => zero state
        return o * jnp.tanh(c_new), c_new

    # --- step 0: all recurrent state is zero, so the only matmul left on the
    # chain is the layer-0 -> layer-1 projection; the input term (incl. the
    # raw x0[:, 2:] "feedback") was folded into g0_pre[0] in the wrapper. ---
    h0, c0 = cell(g0pre_ref[0], None)
    h1, c1 = cell(mm(h0, wih1) + b1, None)
    out_ref[0] = mm(h1, wout) + bout                 # off the recurrence chain

    # TODO(synk): nn.LSTM inter-layer dropout (p=0.5) is train-mode only;
    # eval-mode semantics (identity) are implemented here.

    # --- steps 1..T-1: T is small and static -> fully-unrolled Python loop.
    # Feedback of the previous output enters via h1 @ wfb (see wrapper). ---
    for t in range(1, T):
        gates0 = g0pre_ref[t] + mm(h1, wfb) + mm(h0, whh0)
        h0, c0 = cell(gates0, c0)
        gates1 = mm(h0, wih1) + mm(h1, whh1) + b1
        h1, c1 = cell(gates1, c1)
        out_ref[t] = mm(h1, wout) + bout             # VMEM store; one HBM DMA at end


# ------------------------------- wrapper ---------------------------------- #
def _reorder_gates(w, H):
    """Permute packed gate columns from PyTorch order (i,f,g,o) to (i,f,o,g)."""
    i = w[..., 0 * H:1 * H]
    f = w[..., 1 * H:2 * H]
    g = w[..., 2 * H:3 * H]
    o = w[..., 3 * H:4 * H]
    return jnp.concatenate([i, f, o, g], axis=-1)


def basic_lstm_forward(inputs, params):
    """inputs: (B, T, D) batch-first, like the PyTorch module. Returns (B, T, 2)."""
    B, T, D = inputs.shape
    H = params["whh0"].shape[0]          # weights stored pre-transposed: (in, 4H)
    O = params["wout"].shape[1]
    C = 2                                # number of "context" features
    assert D - C == O, "module feeds its O-dim output back as the last D-2 inputs"

    x_tbd = jnp.transpose(inputs.astype(jnp.float32), (1, 0, 2))   # (T, B, D), time-major
    hi = lax.Precision.HIGHEST           # one-time precompute: keep it exact

    # one-time param prep: gate reorder + split Wih0 into context/feedback rows
    wih0 = _reorder_gates(params["wih0"], H)
    whh0 = _reorder_gates(params["whh0"], H)
    b0 = _reorder_gates(params["b0"], H)
    wih1 = _reorder_gates(params["wih1"], H)
    whh1 = _reorder_gates(params["whh1"], H)
    b1 = _reorder_gates(params["b1"], H)
    wout = params["wout"]
    bout = params["bout"]

    wih0_ctx = wih0[:C, :]               # (C, 4H)
    wih0_fb = wih0[C:, :]                # (O, 4H)

    # All layer-0 pre-activation terms that do NOT depend on the recurrence,
    # computed for every timestep in one batched matmul (off the serial chain):
    #   g0_pre[t] = ctx[t] @ Wih0_ctx + b0 (+ x0[:,2:] @ Wih0_fb at t=0,
    #                                        + bout @ Wih0_fb at t>=1)
    g0_pre = jnp.einsum("tbc,cg->tbg", x_tbd[:, :, :C], wih0_ctx,
                        precision=hi) + b0                           # (T, B, 4H)
    g0_pre = g0_pre.at[0].add(jnp.dot(x_tbd[0, :, C:], wih0_fb, precision=hi))
    g0_pre = g0_pre.at[1:].add(jnp.dot(bout, wih0_fb, precision=hi))

    # Combined feedback matrix: prev_out @ Wih0_fb == h1 @ wfb + (bias folded above).
    wfb = jnp.dot(wout, wih0_fb, precision=hi)                       # (H, 4H)

    # No grid: every operand is a whole-array VMEM block (total footprint
    # ~300 KB incl. weights); the full recurrence runs in one invocation.
    out_tbo = pl.pallas_call(
        basic_lstm_kernel,
        out_shape=jax.ShapeDtypeStruct((T, B, O), jnp.float32),
    )(g0_pre, whh0, wfb, wih1, whh1, b1, wout, bout)

    return jnp.transpose(out_tbo, (1, 0, 2))       # (B, T, 2)


# -------------------------- pure-JAX reference ----------------------------- #
def basic_lstm_reference(inputs, params):
    """Ground-truth reference in PyTorch gate order, full-f32 matmuls."""
    B, T, D = inputs.shape
    H = params["whh0"].shape[0]
    mm = functools.partial(jnp.dot, precision=lax.Precision.HIGHEST)

    def cell(x, h, c, wih, whh, b):
        gates = mm(x, wih) + mm(h, whh) + b
        i = jax.nn.sigmoid(gates[:, 0 * H:1 * H])
        f = jax.nn.sigmoid(gates[:, 1 * H:2 * H])
        g = jnp.tanh(gates[:, 2 * H:3 * H])
        o = jax.nn.sigmoid(gates[:, 3 * H:4 * H])
        c_new = f * c + i * g
        return o * jnp.tanh(c_new), c_new

    h0 = jnp.zeros((B, H)); c0 = jnp.zeros((B, H))
    h1 = jnp.zeros((B, H)); c1 = jnp.zeros((B, H))
    outs = []
    out = None
    for t in range(T):
        if t == 0:
            xt = inputs[:, 0, :]
        else:
            xt = jnp.concatenate([inputs[:, t, :2], out], axis=-1)
        h0, c0 = cell(xt, h0, c0, params["wih0"], params["whh0"], params["b0"][0])
        h1, c1 = cell(h0, h1, c1, params["wih1"], params["whh1"], params["b1"][0])
        out = mm(h1, params["wout"]) + params["bout"][0]
        outs.append(out)
    return jnp.stack(outs, axis=1)


# ------------------------------ param init --------------------------------- #
def init_params(key, input_size=4, hidden=64, output_size=2):
    H = hidden
    bound = 1.0 / jnp.sqrt(H)
    ks = jax.random.split(key, 12)
    u = lambda k, shape: jax.random.uniform(k, shape, jnp.float32, -bound, bound)
    # PyTorch stores weight_ih_l0 as (4H, in) in gate order (i,f,g,o); we keep
    # them pre-transposed (in, 4H) in the same gate order.
    return {
        "wih0": u(ks[0], (input_size, 4 * H)),
        "whh0": u(ks[1], (H, 4 * H)),
        "b0": (u(ks[2], (1, 4 * H)) + u(ks[3], (1, 4 * H))),   # b_ih + b_hh
        "wih1": u(ks[4], (H, 4 * H)),
        "whh1": u(ks[5], (H, 4 * H)),
        "b1": (u(ks[6], (1, 4 * H)) + u(ks[7], (1, 4 * H))),
        "wout": u(ks[8], (H, output_size)),
        "bout": u(ks[9], (1, output_size)),
    }


if __name__ == "__main__":
    key = jax.random.PRNGKey(0)
    k_param, k_in = jax.random.split(key)

    B, T, D, H, O = 2, 8, 4, 64, 2
    params = init_params(k_param, input_size=D, hidden=H, output_size=O)
    inputs = jax.random.normal(k_in, (B, T, D), dtype=jnp.float32)

    fwd = jax.jit(basic_lstm_forward)
    out = jax.block_until_ready(fwd(inputs, params))

    ref = jax.block_until_ready(basic_lstm_reference(inputs, params))
    assert out.shape == (B, T, O), out.shape
    # Kernel uses default (bf16-pass / f32-accumulate) MXU precision vs a
    # full-f32 reference; the bounded LSTM recurrence keeps the gap ~1e-3.
    assert jnp.allclose(out, ref, atol=1e-2, rtol=1e-2), (
        float(jnp.max(jnp.abs(out - ref))))

    print("KERNEL_OK")
</pallas_src>

<mosaic_0001>
module attributes {stable_mosaic.version = 11 : i64} {
  func.func @basic_lstm_kernel(%arg0: memref<8x2x256xf32, #tpu.memory_space<vmem>>, %arg1: memref<64x256xf32, #tpu.memory_space<vmem>>, %arg2: memref<64x256xf32, #tpu.memory_space<vmem>>, %arg3: memref<64x256xf32, #tpu.memory_space<vmem>>, %arg4: memref<64x256xf32, #tpu.memory_space<vmem>>, %arg5: memref<1x256xf32, #tpu.memory_space<vmem>>, %arg6: memref<64x2xf32, #tpu.memory_space<vmem>>, %arg7: memref<1x2xf32, #tpu.memory_space<vmem>>, %arg8: memref<8x2x2xf32, #tpu.memory_space<vmem>>) attributes {dimension_semantics = [], scalar_prefetch = 0 : i64, scratch_operands = 0 : i64, tpu.core_type = #tpu.core_type<tc>} {
    %c0 = arith.constant 0 : index
    %c0_0 = arith.constant 0 : index
    %0 = vector.load %arg1[%c0, %c0_0] : memref<64x256xf32, #tpu.memory_space<vmem>>, vector<64x256xf32>
    %c0_1 = arith.constant 0 : index
    %c0_2 = arith.constant 0 : index
    %1 = vector.load %arg2[%c0_1, %c0_2] : memref<64x256xf32, #tpu.memory_space<vmem>>, vector<64x256xf32>
    %c0_3 = arith.constant 0 : index
    %c0_4 = arith.constant 0 : index
    %2 = vector.load %arg3[%c0_3, %c0_4] : memref<64x256xf32, #tpu.memory_space<vmem>>, vector<64x256xf32>
    %c0_5 = arith.constant 0 : index
    %c0_6 = arith.constant 0 : index
    %3 = vector.load %arg4[%c0_5, %c0_6] : memref<64x256xf32, #tpu.memory_space<vmem>>, vector<64x256xf32>
    %c0_7 = arith.constant 0 : index
    %c0_8 = arith.constant 0 : index
    %4 = vector.load %arg6[%c0_7, %c0_8] : memref<64x2xf32, #tpu.memory_space<vmem>>, vector<64x2xf32>
    %c0_9 = arith.constant 0 : index
    %c0_10 = arith.constant 0 : index
    %5 = vector.load %arg5[%c0_9, %c0_10] : memref<1x256xf32, #tpu.memory_space<vmem>>, vector<1x256xf32>
    %6 = vector.shape_cast %5 : vector<1x256xf32> to vector<1x256xf32>
    %7 = vector.broadcast %6 : vector<1x256xf32> to vector<2x256xf32>
    %c0_11 = arith.constant 0 : index
    %c0_12 = arith.constant 0 : index
    %8 = vector.load %arg7[%c0_11, %c0_12] : memref<1x2xf32, #tpu.memory_space<vmem>>, vector<1x2xf32>
    %9 = vector.shape_cast %8 : vector<1x2xf32> to vector<1x2xf32>
    %10 = vector.broadcast %9 : vector<1x2xf32> to vector<2x2xf32>
    %c0_13 = arith.constant 0 : index
    %c0_14 = arith.constant 0 : index
    %c0_15 = arith.constant 0 : index
    %11 = vector.load %arg0[%c0_13, %c0_14, %c0_15] : memref<8x2x256xf32, #tpu.memory_space<vmem>>, vector<1x2x256xf32>
    %12 = vector.shape_cast %11 : vector<1x2x256xf32> to vector<2x256xf32>
    %13 = vector.extract_strided_slice %12 {offsets = [0, 0], sizes = [2, 192], strides = [1, 1]} : vector<2x256xf32> to vector<2x192xf32>
    %14 = arith.negf %13 : vector<2x192xf32>
    %15 = math.exp %14 : vector<2x192xf32>
    %cst = arith.constant 1.000000e+00 : f32
    %16 = vector.broadcast %cst : f32 to vector<2x192xf32>
    %17 = arith.addf %16, %15 : vector<2x192xf32>
    %18 = arith.divf %16, %17 : vector<2x192xf32>
    %19 = vector.extract_strided_slice %12 {offsets = [0, 192], sizes = [2, 64], strides = [1, 1]} : vector<2x256xf32> to vector<2x64xf32>
    %20 = math.tanh %19 : vector<2x64xf32>
    %21 = vector.extract_strided_slice %18 {offsets = [0, 0], sizes = [2, 64], strides = [1, 1]} : vector<2x192xf32> to vector<2x64xf32>
    %22 = vector.extract_strided_slice %18 {offsets = [0, 128], sizes = [2, 64], strides = [1, 1]} : vector<2x192xf32> to vector<2x64xf32>
    %23 = arith.mulf %21, %20 : vector<2x64xf32>
    %24 = math.tanh %23 : vector<2x64xf32>
    %25 = arith.mulf %22, %24 : vector<2x64xf32>
    %cst_16 = arith.constant dense<0.000000e+00> : vector<2x256xf32>
    %26 = tpu.matmul %25, %2, %cst_16 {dimension_numbers = #tpu.dot_dimension_numbers<[1], [0], [0], [1], [0, 0, 1, 1], [], []>} : vector<2x64xf32>, vector<64x256xf32>, vector<2x256xf32> -> vector<2x256xf32>
    %27 = arith.addf %26, %7 : vector<2x256xf32>
    %28 = vector.extract_strided_slice %27 {offsets = [0, 0], sizes = [2, 192], strides = [1, 1]} : vector<2x256xf32> to vector<2x192xf32>
    %29 = arith.negf %28 : vector<2x192xf32>
    %30 = math.exp %29 : vector<2x192xf32>
    %cst_17 = arith.constant 1.000000e+00 : f32
    %31 = vector.broadcast %cst_17 : f32 to vector<2x192xf32>
    %32 = arith.addf %31, %30 : vector<2x192xf32>
    %33 = arith.divf %31, %32 : vector<2x192xf32>
    %34 = vector.extract_strided_slice %27 {offsets = [0, 192], sizes = [2, 64], strides = [1, 1]} : vector<2x256xf32> to vector<2x64xf32>
    %35 = math.tanh %34 : vector<2x64xf32>
    %36 = vector.extract_strided_slice %33 {offsets = [0, 0], sizes = [2, 64], strides = [1, 1]} : vector<2x192xf32> to vector<2x64xf32>
    %37 = vector.extract_strided_slice %33 {offsets = [0, 128], sizes = [2, 64], strides = [1, 1]} : vector<2x192xf32> to vector<2x64xf32>
    %38 = arith.mulf %36, %35 : vector<2x64xf32>
    %39 = math.tanh %38 : vector<2x64xf32>
    %40 = arith.mulf %37, %39 : vector<2x64xf32>
    %cst_18 = arith.constant dense<0.000000e+00> : vector<2x2xf32>
    %41 = tpu.matmul %40, %4, %cst_18 {dimension_numbers = #tpu.dot_dimension_numbers<[1], [0], [0], [1], [0, 0, 1, 1], [], []>} : vector<2x64xf32>, vector<64x2xf32>, vector<2x2xf32> -> vector<2x2xf32>
    %42 = arith.addf %41, %10 : vector<2x2xf32>
    %c0_19 = arith.constant 0 : index
    %c0_20 = arith.constant 0 : index
    %c0_21 = arith.constant 0 : index
    %43 = vector.load %arg8[%c0_19, %c0_20, %c0_21] : memref<8x2x2xf32, #tpu.memory_space<vmem>>, vector<1x2x2xf32>
    %44 = vector.shape_cast %43 : vector<1x2x2xf32> to vector<2x2xf32>
    %45 = vector.shape_cast %42 : vector<2x2xf32> to vector<1x2x2xf32>
    tpu.vector_store %arg8[%c0_19, %c0_20, %c0_21], %45 {strides = array<i32>} : memref<8x2x2xf32, #tpu.memory_space<vmem>>, vector<1x2x2xf32>,
    %c1 = arith.constant 1 : index
    %c0_22 = arith.constant 0 : index
    %c0_23 = arith.constant 0 : index
    %46 = vector.load %arg0[%c1, %c0_22, %c0_23] : memref<8x2x256xf32, #tpu.memory_space<vmem>>, vector<1x2x256xf32>
    %47 = vector.shape_cast %46 : vector<1x2x256xf32> to vector<2x256xf32>
    %cst_24 = arith.constant dense<0.000000e+00> : vector<2x256xf32>
    %48 = tpu.matmul %40, %1, %cst_24 {dimension_numbers = #tpu.dot_dimension_numbers<[1], [0], [0], [1], [0, 0, 1, 1], [], []>} : vector<2x64xf32>, vector<64x256xf32>, vector<2x256xf32> -> vector<2x256xf32>
    %49 = arith.addf %47, %48 : vector<2x256xf32>
    %cst_25 = arith.constant dense<0.000000e+00> : vector<2x256xf32>
    %50 = tpu.matmul %25, %0, %cst_25 {dimension_numbers = #tpu.dot_dimension_numbers<[1], [0], [0], [1], [0, 0, 1, 1], [], []>} : vector<2x64xf32>, vector<64x256xf32>, vector<2x256xf32> -> vector<2x256xf32>
    %51 = arith.addf %49, %50 : vector<2x256xf32>
    %52 = vector.extract_strided_slice %51 {offsets = [0, 0], sizes = [2, 192], strides = [1, 1]} : vector<2x256xf32> to vector<2x192xf32>
    %53 = arith.negf %52 : vector<2x192xf32>
    %54 = math.exp %53 : vector<2x192xf32>
    %cst_26 = arith.constant 1.000000e+00 : f32
    %55 = vector.broadcast %cst_26 : f32 to vector<2x192xf32>
    %56 = arith.addf %55, %54 : vector<2x192xf32>
    %57 = arith.divf %55, %56 : vector<2x192xf32>
    %58 = vector.extract_strided_slice %51 {offsets = [0, 192], sizes = [2, 64], strides = [1, 1]} : vector<2x256xf32> to vector<2x64xf32>
    %59 = math.tanh %58 : vector<2x64xf32>
    %60 = vector.extract_strided_slice %57 {offsets = [0, 0], sizes = [2, 64], strides = [1, 1]} : vector<2x192xf32> to vector<2x64xf32>
    %61 = vector.extract_strided_slice %57 {offsets = [0, 64], sizes = [2, 64], strides = [1, 1]} : vector<2x192xf32> to vector<2x64xf32>
    %62 = vector.extract_strided_slice %57 {offsets = [0, 128], sizes = [2, 64], strides = [1, 1]} : vector<2x192xf32> to vector<2x64xf32>
    %63 = arith.mulf %61, %23 : vector<2x64xf32>
    %64 = arith.mulf %60, %59 : vector<2x64xf32>
    %65 = arith.addf %63, %64 : vector<2x64xf32>
    %66 = math.tanh %65 : vector<2x64xf32>
    %67 = arith.mulf %62, %66 : vector<2x64xf32>
    %cst_27 = arith.constant dense<0.000000e+00> : vector<2x256xf32>
    %68 = tpu.matmul %67, %2, %cst_27 {dimension_numbers = #tpu.dot_dimension_numbers<[1], [0], [0], [1], [0, 0, 1, 1], [], []>} : vector<2x64xf32>, vector<64x256xf32>, vector<2x256xf32> -> vector<2x256xf32>
    %cst_28 = arith.constant dense<0.000000e+00> : vector<2x256xf32>
    %69 = tpu.matmul %40, %3, %cst_28 {dimension_numbers = #tpu.dot_dimension_numbers<[1], [0], [0], [1], [0, 0, 1, 1], [], []>} : vector<2x64xf32>, vector<64x256xf32>, vector<2x256xf32> -> vector<2x256xf32>
    %70 = arith.addf %68, %69 : vector<2x256xf32>
    %71 = arith.addf %70, %7 : vector<2x256xf32>
    %72 = vector.extract_strided_slice %71 {offsets = [0, 0], sizes = [2, 192], strides = [1, 1]} : vector<2x256xf32> to vector<2x192xf32>
    %73 = arith.negf %72 : vector<2x192xf32>
    %74 = math.exp %73 : vector<2x192xf32>
    %cst_29 = arith.constant 1.000000e+00 : f32
    %75 = vector.broadcast %cst_29 : f32 to vector<2x192xf32>
    %76 = arith.addf %75, %74 : vector<2x192xf32>
    %77 = arith.divf %75, %76 : vector<2x192xf32>
    %78 = vector.extract_strided_slice %71 {offsets = [0, 192], sizes = [2, 64], strides = [1, 1]} : vector<2x256xf32> to vector<2x64xf32>
    %79 = math.tanh %78 : vector<2x64xf32>
    %80 = vector.extract_strided_slice %77 {offsets = [0, 0], sizes = [2, 64], strides = [1, 1]} : vector<2x192xf32> to vector<2x64xf32>
    %81 = vector.extract_strided_slice %77 {offsets = [0, 64], sizes = [2, 64], strides = [1, 1]} : vector<2x192xf32> to vector<2x64xf32>
    %82 = vector.extract_strided_slice %77 {offsets = [0, 128], sizes = [2, 64], strides = [1, 1]} : vector<2x192xf32> to vector<2x64xf32>
    %83 = arith.mulf %81, %38 : vector<2x64xf32>
    %84 = arith.mulf %80, %79 : vector<2x64xf32>
    %85 = arith.addf %83, %84 : vector<2x64xf32>
    %86 = math.tanh %85 : vector<2x64xf32>
    %87 = arith.mulf %82, %86 : vector<2x64xf32>
    %cst_30 = arith.constant dense<0.000000e+00> : vector<2x2xf32>
    %88 = tpu.matmul %87, %4, %cst_30 {dimension_numbers = #tpu.dot_dimension_numbers<[1], [0], [0], [1], [0, 0, 1, 1], [], []>} : vector<2x64xf32>, vector<64x2xf32>, vector<2x2xf32> -> vector<2x2xf32>
    %89 = arith.addf %88, %10 : vector<2x2xf32>
    %c1_31 = arith.constant 1 : index
    %c0_32 = arith.constant 0 : index
    %c0_33 = arith.constant 0 : index
    %90 = vector.load %arg8[%c1_31, %c0_32, %c0_33] : memref<8x2x2xf32, #tpu.memory_space<vmem>>, vector<1x2x2xf32>
    %91 = vector.shape_cast %90 : vector<1x2x2xf32> to vector<2x2xf32>
    %92 = vector.shape_cast %89 : vector<2x2xf32> to vector<1x2x2xf32>
    tpu.vector_store %arg8[%c1_31, %c0_32, %c0_33], %92 {strides = array<i32>} : memref<8x2x2xf32, #tpu.memory_space<vmem>>, vector<1x2x2xf32>,
    %c2 = arith.constant 2 : index
    %c0_34 = arith.constant 0 : index
    %c0_35 = arith.constant 0 : index
    %93 = vector.load %arg0[%c2, %c0_34, %c0_35] : memref<8x2x256xf32, #tpu.memory_space<vmem>>, vector<1x2x256xf32>
    %94 = vector.shape_cast %93 : vector<1x2x256xf32> to vector<2x256xf32>
    %cst_36 = arith.constant dense<0.000000e+00> : vector<2x256xf32>
    %95 = tpu.matmul %87, %1, %cst_36 {dimension_numbers = #tpu.dot_dimension_numbers<[1], [0], [0], [1], [0, 0, 1, 1], [], []>} : vector<2x64xf32>, vector<64x256xf32>, vector<2x256xf32> -> vector<2x256xf32>
    %96 = arith.addf %94, %95 : vector<2x256xf32>
    %cst_37 = arith.constant dense<0.000000e+00> : vector<2x256xf32>
    %97 = tpu.matmul %67, %0, %cst_37 {dimension_numbers = #tpu.dot_dimension_numbers<[1], [0], [0], [1], [0, 0, 1, 1], [], []>} : vector<2x64xf32>, vector<64x256xf32>, vector<2x256xf32> -> vector<2x256xf32>
    %98 = arith.addf %96, %97 : vector<2x256xf32>
    %99 = vector.extract_strided_slice %98 {offsets = [0, 0], sizes = [2, 192], strides = [1, 1]} : vector<2x256xf32> to vector<2x192xf32>
    %100 = arith.negf %99 : vector<2x192xf32>
    %101 = math.exp %100 : vector<2x192xf32>
    %cst_38 = arith.constant 1.000000e+00 : f32
    %102 = vector.broadcast %cst_38 : f32 to vector<2x192xf32>
    %103 = arith.addf %102, %101 : vector<2x192xf32>
    %104 = arith.divf %102, %103 : vector<2x192xf32>
    %105 = vector.extract_strided_slice %98 {offsets = [0, 192], sizes = [2, 64], strides = [1, 1]} : vector<2x256xf32> to vector<2x64xf32>
    %106 = math.tanh %105 : vector<2x64xf32>
    %107 = vector.extract_strided_slice %104 {offsets = [0, 0], sizes = [2, 64], strides = [1, 1]} : vector<2x192xf32> to vector<2x64xf32>
    %108 = vector.extract_strided_slice %104 {offsets = [0, 64], sizes = [2, 64], strides = [1, 1]} : vector<2x192xf32> to vector<2x64xf32>
    %109 = vector.extract_strided_slice %104 {offsets = [0, 128], sizes = [2, 64], strides = [1, 1]} : vector<2x192xf32> to vector<2x64xf32>
    %110 = arith.mulf %108, %65 : vector<2x64xf32>
    %111 = arith.mulf %107, %106 : vector<2x64xf32>
    %112 = arith.addf %110, %111 : vector<2x64xf32>
    %113 = math.tanh %112 : vector<2x64xf32>
    %114 = arith.mulf %109, %113 : vector<2x64xf32>
    %cst_39 = arith.constant dense<0.000000e+00> : vector<2x256xf32>
    %115 = tpu.matmul %114, %2, %cst_39 {dimension_numbers = #tpu.dot_dimension_numbers<[1], [0], [0], [1], [0, 0, 1, 1], [], []>} : vector<2x64xf32>, vector<64x256xf32>, vector<2x256xf32> -> vector<2x256xf32>
    %cst_40 = arith.constant dense<0.000000e+00> : vector<2x256xf32>
    %116 = tpu.matmul %87, %3, %cst_40 {dimension_numbers = #tpu.dot_dimension_numbers<[1], [0], [0], [1], [0, 0, 1, 1], [], []>} : vector<2x64xf32>, vector<64x256xf32>, vector<2x256xf32> -> vector<2x256xf32>
    %117 = arith.addf %115, %116 : vector<2x256xf32>
    %118 = arith.addf %117, %7 : vector<2x256xf32>
    %119 = vector.extract_strided_slice %118 {offsets = [0, 0], sizes = [2, 192], strides = [1, 1]} : vector<2x256xf32> to vector<2x192xf32>
    %120 = arith.negf %119 : vector<2x192xf32>
    %121 = math.exp %120 : vector<2x192xf32>
    %cst_41 = arith.constant 1.000000e+00 : f32
    %122 = vector.broadcast %cst_41 : f32 to vector<2x192xf32>
    %123 = arith.addf %122, %121 : vector<2x192xf32>
    %124 = arith.divf %122, %123 : vector<2x192xf32>
    %125 = vector.extract_strided_slice %118 {offsets = [0, 192], sizes = [2, 64], strides = [1, 1]} : vector<2x256xf32> to vector<2x64xf32>
    %126 = math.tanh %125 : vector<2x64xf32>
    %127 = vector.extract_strided_slice %124 {offsets = [0, 0], sizes = [2, 64], strides = [1, 1]} : vector<2x192xf32> to vector<2x64xf32>
    %128 = vector.extract_strided_slice %124 {offsets = [0, 64], sizes = [2, 64], strides = [1, 1]} : vector<2x192xf32> to vector<2x64xf32>
    %129 = vector.extract_strided_slice %124 {offsets = [0, 128], sizes = [2, 64], strides = [1, 1]} : vector<2x192xf32> to vector<2x64xf32>
    %130 = arith.mulf %128, %85 : vector<2x64xf32>
    %131 = arith.mulf %127, %126 : vector<2x64xf32>
    %132 = arith.addf %130, %131 : vector<2x64xf32>
    %133 = math.tanh %132 : vector<2x64xf32>
    %134 = arith.mulf %129, %133 : vector<2x64xf32>
    %cst_42 = arith.constant dense<0.000000e+00> : vector<2x2xf32>
    %135 = tpu.matmul %134, %4, %cst_42 {dimension_numbers = #tpu.dot_dimension_numbers<[1], [0], [0], [1], [0, 0, 1, 1], [], []>} : vector<2x64xf32>, vector<64x2xf32>, vector<2x2xf32> -> vector<2x2xf32>
    %136 = arith.addf %135, %10 : vector<2x2xf32>
    %c2_43 = arith.constant 2 : index
    %c0_44 = arith.constant 0 : index
    %c0_45 = arith.constant 0 : index
    %137 = vector.load %arg8[%c2_43, %c0_44, %c0_45] : memref<8x2x2xf32, #tpu.memory_space<vmem>>, vector<1x2x2xf32>
    %138 = vector.shape_cast %137 : vector<1x2x2xf32> to vector<2x2xf32>
    %139 = vector.shape_cast %136 : vector<2x2xf32> to vector<1x2x2xf32>
    tpu.vector_store %arg8[%c2_43, %c0_44, %c0_45], %139 {strides = array<i32>} : memref<8x2x2xf32, #tpu.memory_space<vmem>>, vector<1x2x2xf32>,
    %c3 = arith.constant 3 : index
    %c0_46 = arith.constant 0 : index
    %c0_47 = arith.constant 0 : index
    %140 = vector.load %arg0[%c3, %c0_46, %c0_47] : memref<8x2x256xf32, #tpu.memory_space<vmem>>, vector<1x2x256xf32>
    %141 = vector.shape_cast %140 : vector<1x2x256xf32> to vector<2x256xf32>
    %cst_48 = arith.constant dense<0.000000e+00> : vector<2x256xf32>
    %142 = tpu.matmul %134, %1, %cst_48 {dimension_numbers = #tpu.dot_dimension_numbers<[1], [0], [0], [1], [0, 0, 1, 1], [], []>} : vector<2x64xf32>, vector<64x256xf32>, vector<2x256xf32> -> vector<2x256xf32>
    %143 = arith.addf %141, %142 : vector<2x256xf32>
    %cst_49 = arith.constant dense<0.000000e+00> : vector<2x256xf32>
    %144 = tpu.matmul %114, %0, %cst_49 {dimension_numbers = #tpu.dot_dimension_numbers<[1], [0], [0], [1], [0, 0, 1, 1], [], []>} : vector<2x64xf32>, vector<64x256xf32>, vector<2x256xf32> -> vector<2x256xf32>
    %145 = arith.addf %143, %144 : vector<2x256xf32>
    %146 = vector.extract_strided_slice %145 {offsets = [0, 0], sizes = [2, 192], strides = [1, 1]} : vector<2x256xf32> to vector<2x192xf32>
    %147 = arith.negf %146 : vector<2x192xf32>
    %148 = math.exp %147 : vector<2x192xf32>
    %cst_50 = arith.constant 1.000000e+00 : f32
    %149 = vector.broadcast %cst_50 : f32 to vector<2x192xf32>
    %150 = arith.addf %149, %148 : vector<2x192xf32>
    %151 = arith.divf %149, %150 : vector<2x192xf32>
    %152 = vector.extract_strided_slice %145 {offsets = [0, 192], sizes = [2, 64], strides = [1, 1]} : vector<2x256xf32> to vector<2x64xf32>
    %153 = math.tanh %152 : vector<2x64xf32>
    %154 = vector.extract_strided_slice %151 {offsets = [0, 0], sizes = [2, 64], strides = [1, 1]} : vector<2x192xf32> to vector<2x64xf32>
    %155 = vector.extract_strided_slice %151 {offsets = [0, 64], sizes = [2, 64], strides = [1, 1]} : vector<2x192xf32> to vector<2x64xf32>
    %156 = vector.extract_strided_slice %151 {offsets = [0, 128], sizes = [2, 64], strides = [1, 1]} : vector<2x192xf32> to vector<2x64xf32>
    %157 = arith.mulf %155, %112 : vector<2x64xf32>
    %158 = arith.mulf %154, %153 : vector<2x64xf32>
    %159 = arith.addf %157, %158 : vector<2x64xf32>
    %160 = math.tanh %159 : vector<2x64xf32>
    %161 = arith.mulf %156, %160 : vector<2x64xf32>
    %cst_51 = arith.constant dense<0.000000e+00> : vector<2x256xf32>
    %162 = tpu.matmul %161, %2, %cst_51 {dimension_numbers = #tpu.dot_dimension_numbers<[1], [0], [0], [1], [0, 0, 1, 1], [], []>} : vector<2x64xf32>, vector<64x256xf32>, vector<2x256xf32> -> vector<2x256xf32>
    %cst_52 = arith.constant dense<0.000000e+00> : vector<2x256xf32>
    %163 = tpu.matmul %134, %3, %cst_52 {dimension_numbers = #tpu.dot_dimension_numbers<[1], [0], [0], [1], [0, 0, 1, 1], [], []>} : vector<2x64xf32>, vector<64x256xf32>, vector<2x256xf32> -> vector<2x256xf32>
    %164 = arith.addf %162, %163 : vector<2x256xf32>
    %165 = arith.addf %164, %7 : vector<2x256xf32>
    %166 = vector.extract_strided_slice %165 {offsets = [0, 0], sizes = [2, 192], strides = [1, 1]} : vector<2x256xf32> to vector<2x192xf32>
    %167 = arith.negf %166 : vector<2x192xf32>
    %168 = math.exp %167 : vector<2x192xf32>
    %cst_53 = arith.constant 1.000000e+00 : f32
    %169 = vector.broadcast %cst_53 : f32 to vector<2x192xf32>
    %170 = arith.addf %169, %168 : vector<2x192xf32>
    %171 = arith.divf %169, %170 : vector<2x192xf32>
    %172 = vector.extract_strided_slice %165 {offsets = [0, 192], sizes = [2, 64], strides = [1, 1]} : vector<2x256xf32> to vector<2x64xf32>
    %173 = math.tanh %172 : vector<2x64xf32>
    %174 = vector.extract_strided_slice %171 {offsets = [0, 0], sizes = [2, 64], strides = [1, 1]} : vector<2x192xf32> to vector<2x64xf32>
    %175 = vector.extract_strided_slice %171 {offsets = [0, 64], sizes = [2, 64], strides = [1, 1]} : vector<2x192xf32> to vector<2x64xf32>
    %176 = vector.extract_strided_slice %171 {offsets = [0, 128], sizes = [2, 64], strides = [1, 1]} : vector<2x192xf32> to vector<2x64xf32>
    %177 = arith.mulf %175, %132 : vector<2x64xf32>
    %178 = arith.mulf %174, %173 : vector<2x64xf32>
    %179 = arith.addf %177, %178 : vector<2x64xf32>
    %180 = math.tanh %179 : vector<2x64xf32>
    %181 = arith.mulf %176, %180 : vector<2x64xf32>
    %cst_54 = arith.constant dense<0.000000e+00> : vector<2x2xf32>
    %182 = tpu.matmul %181, %4, %cst_54 {dimension_numbers = #tpu.dot_dimension_numbers<[1], [0], [0], [1], [0, 0, 1, 1], [], []>} : vector<2x64xf32>, vector<64x2xf32>, vector<2x2xf32> -> vector<2x2xf32>
    %183 = arith.addf %182, %10 : vector<2x2xf32>
    %c3_55 = arith.constant 3 : index
    %c0_56 = arith.constant 0 : index
    %c0_57 = arith.constant 0 : index
    %184 = vector.load %arg8[%c3_55, %c0_56, %c0_57] : memref<8x2x2xf32, #tpu.memory_space<vmem>>, vector<1x2x2xf32>
    %185 = vector.shape_cast %184 : vector<1x2x2xf32> to vector<2x2xf32>
    %186 = vector.shape_cast %183 : vector<2x2xf32> to vector<1x2x2xf32>
    tpu.vector_store %arg8[%c3_55, %c0_56, %c0_57], %186 {strides = array<i32>} : memref<8x2x2xf32, #tpu.memory_space<vmem>>, vector<1x2x2xf32>,
    %c4 = arith.constant 4 : index
    %c0_58 = arith.constant 0 : index
    %c0_59 = arith.constant 0 : index
    %187 = vector.load %arg0[%c4, %c0_58, %c0_59] : memref<8x2x256xf32, #tpu.memory_space<vmem>>, vector<1x2x256xf32>
    %188 = vector.shape_cast %187 : vector<1x2x256xf32> to vector<2x256xf32>
    %cst_60 = arith.constant dense<0.000000e+00> : vector<2x256xf32>
    %189 = tpu.matmul %181, %1, %cst_60 {dimension_numbers = #tpu.dot_dimension_numbers<[1], [0], [0], [1], [0, 0, 1, 1], [], []>} : vector<2x64xf32>, vector<64x256xf32>, vector<2x256xf32> -> vector<2x256xf32>
    %190 = arith.addf %188, %189 : vector<2x256xf32>
    %cst_61 = arith.constant dense<0.000000e+00> : vector<2x256xf32>
    %191 = tpu.matmul %161, %0, %cst_61 {dimension_numbers = #tpu.dot_dimension_numbers<[1], [0], [0], [1], [0, 0, 1, 1], [], []>} : vector<2x64xf32>, vector<64x256xf32>, vector<2x256xf32> -> vector<2x256xf32>
    %192 = arith.addf %190, %191 : vector<2x256xf32>
    %193 = vector.extract_strided_slice %192 {offsets = [0, 0], sizes = [2, 192], strides = [1, 1]} : vector<2x256xf32> to vector<2x192xf32>
    %194 = arith.negf %193 : vector<2x192xf32>
    %195 = math.exp %194 : vector<2x192xf32>
    %cst_62 = arith.constant 1.000000e+00 : f32
    %196 = vector.broadcast %cst_62 : f32 to vector<2x192xf32>
    %197 = arith.addf %196, %195 : vector<2x192xf32>
    %198 = arith.divf %196, %197 : vector<2x192xf32>
    %199 = vector.extract_strided_slice %192 {offsets = [0, 192], sizes = [2, 64], strides = [1, 1]} : vector<2x256xf32> to vector<2x64xf32>
    %200 = math.tanh %199 : vector<2x64xf32>
    %201 = vector.extract_strided_slice %198 {offsets = [0, 0], sizes = [2, 64], strides = [1, 1]} : vector<2x192xf32> to vector<2x64xf32>
    %202 = vector.extract_strided_slice %198 {offsets = [0, 64], sizes = [2, 64], strides = [1, 1]} : vector<2x192xf32> to vector<2x64xf32>
    %203 = vector.extract_strided_slice %198 {offsets = [0, 128], sizes = [2, 64], strides = [1, 1]} : vector<2x192xf32> to vector<2x64xf32>
    %204 = arith.mulf %202, %159 : vector<2x64xf32>
    %205 = arith.mulf %201, %200 : vector<2x64xf32>
    %206 = arith.addf %204, %205 : vector<2x64xf32>
    %207 = math.tanh %206 : vector<2x64xf32>
    %208 = arith.mulf %203, %207 : vector<2x64xf32>
    %cst_63 = arith.constant dense<0.000000e+00> : vector<2x256xf32>
    %209 = tpu.matmul %208, %2, %cst_63 {dimension_numbers = #tpu.dot_dimension_numbers<[1], [0], [0], [1], [0, 0, 1, 1], [], []>} : vector<2x64xf32>, vector<64x256xf32>, vector<2x256xf32> -> vector<2x256xf32>
    %cst_64 = arith.constant dense<0.000000e+00> : vector<2x256xf32>
    %210 = tpu.matmul %181, %3, %cst_64 {dimension_numbers = #tpu.dot_dimension_numbers<[1], [0], [0], [1], [0, 0, 1, 1], [], []>} : vector<2x64xf32>, vector<64x256xf32>, vector<2x256xf32> -> vector<2x256xf32>
    %211 = arith.addf %209, %210 : vector<2x256xf32>
    %212 = arith.addf %211, %7 : vector<2x256xf32>
    %213 = vector.extract_strided_slice %212 {offsets = [0, 0], sizes = [2, 192], strides = [1, 1]} : vector<2x256xf32> to vector<2x192xf32>
    %214 = arith.negf %213 : vector<2x192xf32>
    %215 = math.exp %214 : vector<2x192xf32>
    %cst_65 = arith.constant 1.000000e+00 : f32
    %216 = vector.broadcast %cst_65 : f32 to vector<2x192xf32>
    %217 = arith.addf %216, %215 : vector<2x192xf32>
    %218 = arith.divf %216, %217 : vector<2x192xf32>
    %219 = vector.extract_strided_slice %212 {offsets = [0, 192], sizes = [2, 64], strides = [1, 1]} : vector<2x256xf32> to vector<2x64xf32>
    %220 = math.tanh %219 : vector<2x64xf32>
    %221 = vector.extract_strided_slice %218 {offsets = [0, 0], sizes = [2, 64], strides = [1, 1]} : vector<2x192xf32> to vector<2x64xf32>
    %222 = vector.extract_strided_slice %218 {offsets = [0, 64], sizes = [2, 64], strides = [1, 1]} : vector<2x192xf32> to vector<2x64xf32>
    %223 = vector.extract_strided_slice %218 {offsets = [0, 128], sizes = [2, 64], strides = [1, 1]} : vector<2x192xf32> to vector<2x64xf32>
    %224 = arith.mulf %222, %179 : vector<2x64xf32>
    %225 = arith.mulf %221, %220 : vector<2x64xf32>
    %226 = arith.addf %224, %225 : vector<2x64xf32>
    %227 = math.tanh %226 : vector<2x64xf32>
    %228 = arith.mulf %223, %227 : vector<2x64xf32>
    %cst_66 = arith.constant dense<0.000000e+00> : vector<2x2xf32>
    %229 = tpu.matmul %228, %4, %cst_66 {dimension_numbers = #tpu.dot_dimension_numbers<[1], [0], [0], [1], [0, 0, 1, 1], [], []>} : vector<2x64xf32>, vector<64x2xf32>, vector<2x2xf32> -> vector<2x2xf32>
    %230 = arith.addf %229, %10 : vector<2x2xf32>
    %c4_67 = arith.constant 4 : index
    %c0_68 = arith.constant 0 : index
    %c0_69 = arith.constant 0 : index
    %231 = vector.load %arg8[%c4_67, %c0_68, %c0_69] : memref<8x2x2xf32, #tpu.memory_space<vmem>>, vector<1x2x2xf32>
    %232 = vector.shape_cast %231 : vector<1x2x2xf32> to vector<2x2xf32>
    %233 = vector.shape_cast %230 : vector<2x2xf32> to vector<1x2x2xf32>
    tpu.vector_store %arg8[%c4_67, %c0_68, %c0_69], %233 {strides = array<i32>} : memref<8x2x2xf32, #tpu.memory_space<vmem>>, vector<1x2x2xf32>,
    %c5 = arith.constant 5 : index
    %c0_70 = arith.constant 0 : index
    %c0_71 = arith.constant 0 : index
    %234 = vector.load %arg0[%c5, %c0_70, %c0_71] : memref<8x2x256xf32, #tpu.memory_space<vmem>>, vector<1x2x256xf32>
    %235 = vector.shape_cast %234 : vector<1x2x256xf32> to vector<2x256xf32>
    %cst_72 = arith.constant dense<0.000000e+00> : vector<2x256xf32>
    %236 = tpu.matmul %228, %1, %cst_72 {dimension_numbers = #tpu.dot_dimension_numbers<[1], [0], [0], [1], [0, 0, 1, 1], [], []>} : vector<2x64xf32>, vector<64x256xf32>, vector<2x256xf32> -> vector<2x256xf32>
    %237 = arith.addf %235, %236 : vector<2x256xf32>
    %cst_73 = arith.constant dense<0.000000e+00> : vector<2x256xf32>
    %238 = tpu.matmul %208, %0, %cst_73 {dimension_numbers = #tpu.dot_dimension_numbers<[1], [0], [0], [1], [0, 0, 1, 1], [], []>} : vector<2x64xf32>, vector<64x256xf32>, vector<2x256xf32> -> vector<2x256xf32>
    %239 = arith.addf %237, %238 : vector<2x256xf32>
    %240 = vector.extract_strided_slice %239 {offsets = [0, 0], sizes = [2, 192], strides = [1, 1]} : vector<2x256xf32> to vector<2x192xf32>
    %241 = arith.negf %240 : vector<2x192xf32>
    %242 = math.exp %241 : vector<2x192xf32>
    %cst_74 = arith.constant 1.000000e+00 : f32
    %243 = vector.broadcast %cst_74 : f32 to vector<2x192xf32>
    %244 = arith.addf %243, %242 : vector<2x192xf32>
    %245 = arith.divf %243, %244 : vector<2x192xf32>
    %246 = vector.extract_strided_slice %239 {offsets = [0, 192], sizes = [2, 64], strides = [1, 1]} : vector<2x256xf32> to vector<2x64xf32>
    %247 = math.tanh %246 : vector<2x64xf32>
    %248 = vector.extract_strided_slice %245 {offsets = [0, 0], sizes = [2, 64], strides = [1, 1]} : vector<2x192xf32> to vector<2x64xf32>
    %249 = vector.extract_strided_slice %245 {offsets = [0, 64], sizes = [2, 64], strides = [1, 1]} : vector<2x192xf32> to vector<2x64xf32>
    %250 = vector.extract_strided_slice %245 {offsets = [0, 128], sizes = [2, 64], strides = [1, 1]} : vector<2x192xf32> to vector<2x64xf32>
    %251 = arith.mulf %249, %206 : vector<2x64xf32>
    %252 = arith.mulf %248, %247 : vector<2x64xf32>
    %253 = arith.addf %251, %252 : vector<2x64xf32>
    %254 = math.tanh %253 : vector<2x64xf32>
    %255 = arith.mulf %250, %254 : vector<2x64xf32>
    %cst_75 = arith.constant dense<0.000000e+00> : vector<2x256xf32>
    %256 = tpu.matmul %255, %2, %cst_75 {dimension_numbers = #tpu.dot_dimension_numbers<[1], [0], [0], [1], [0, 0, 1, 1], [], []>} : vector<2x64xf32>, vector<64x256xf32>, vector<2x256xf32> -> vector<2x256xf32>
    %cst_76 = arith.constant dense<0.000000e+00> : vector<2x256xf32>
    %257 = tpu.matmul %228, %3, %cst_76 {dimension_numbers = #tpu.dot_dimension_numbers<[1], [0], [0], [1], [0, 0, 1, 1], [], []>} : vector<2x64xf32>, vector<64x256xf32>, vector<2x256xf32> -> vector<2x256xf32>
    %258 = arith.addf %256, %257 : vector<2x256xf32>
    %259 = arith.addf %258, %7 : vector<2x256xf32>
    %260 = vector.extract_strided_slice %259 {offsets = [0, 0], sizes = [2, 192], strides = [1, 1]} : vector<2x256xf32> to vector<2x192xf32>
    %261 = arith.negf %260 : vector<2x192xf32>
    %262 = math.exp %261 : vector<2x192xf32>
    %cst_77 = arith.constant 1.000000e+00 : f32
    %263 = vector.broadcast %cst_77 : f32 to vector<2x192xf32>
    %264 = arith.addf %263, %262 : vector<2x192xf32>
    %265 = arith.divf %263, %264 : vector<2x192xf32>
    %266 = vector.extract_strided_slice %259 {offsets = [0, 192], sizes = [2, 64], strides = [1, 1]} : vector<2x256xf32> to vector<2x64xf32>
    %267 = math.tanh %266 : vector<2x64xf32>
    %268 = vector.extract_strided_slice %265 {offsets = [0, 0], sizes = [2, 64], strides = [1, 1]} : vector<2x192xf32> to vector<2x64xf32>
    %269 = vector.extract_strided_slice %265 {offsets = [0, 64], sizes = [2, 64], strides = [1, 1]} : vector<2x192xf32> to vector<2x64xf32>
    %270 = vector.extract_strided_slice %265 {offsets = [0, 128], sizes = [2, 64], strides = [1, 1]} : vector<2x192xf32> to vector<2x64xf32>
    %271 = arith.mulf %269, %226 : vector<2x64xf32>
    %272 = arith.mulf %268, %267 : vector<2x64xf32>
    %273 = arith.addf %271, %272 : vector<2x64xf32>
    %274 = math.tanh %273 : vector<2x64xf32>
    %275 = arith.mulf %270, %274 : vector<2x64xf32>
    %cst_78 = arith.constant dense<0.000000e+00> : vector<2x2xf32>
    %276 = tpu.matmul %275, %4, %cst_78 {dimension_numbers = #tpu.dot_dimension_numbers<[1], [0], [0], [1], [0, 0, 1, 1], [], []>} : vector<2x64xf32>, vector<64x2xf32>, vector<2x2xf32> -> vector<2x2xf32>
    %277 = arith.addf %276, %10 : vector<2x2xf32>
    %c5_79 = arith.constant 5 : index
    %c0_80 = arith.constant 0 : index
    %c0_81 = arith.constant 0 : index
    %278 = vector.load %arg8[%c5_79, %c0_80, %c0_81] : memref<8x2x2xf32, #tpu.memory_space<vmem>>, vector<1x2x2xf32>
    %279 = vector.shape_cast %278 : vector<1x2x2xf32> to vector<2x2xf32>
    %280 = vector.shape_cast %277 : vector<2x2xf32> to vector<1x2x2xf32>
    tpu.vector_store %arg8[%c5_79, %c0_80, %c0_81], %280 {strides = array<i32>} : memref<8x2x2xf32, #tpu.memory_space<vmem>>, vector<1x2x2xf32>,
    %c6 = arith.constant 6 : index
    %c0_82 = arith.constant 0 : index
    %c0_83 = arith.constant 0 : index
    %281 = vector.load %arg0[%c6, %c0_82, %c0_83] : memref<8x2x256xf32, #tpu.memory_space<vmem>>, vector<1x2x256xf32>
    %282 = vector.shape_cast %281 : vector<1x2x256xf32> to vector<2x256xf32>
    %cst_84 = arith.constant dense<0.000000e+00> : vector<2x256xf32>
    %283 = tpu.matmul %275, %1, %cst_84 {dimension_numbers = #tpu.dot_dimension_numbers<[1], [0], [0], [1], [0, 0, 1, 1], [], []>} : vector<2x64xf32>, vector<64x256xf32>, vector<2x256xf32> -> vector<2x256xf32>
    %284 = arith.addf %282, %283 : vector<2x256xf32>
    %cst_85 = arith.constant dense<0.000000e+00> : vector<2x256xf32>
    %285 = tpu.matmul %255, %0, %cst_85 {dimension_numbers = #tpu.dot_dimension_numbers<[1], [0], [0], [1], [0, 0, 1, 1], [], []>} : vector<2x64xf32>, vector<64x256xf32>, vector<2x256xf32> -> vector<2x256xf32>
    %286 = arith.addf %284, %285 : vector<2x256xf32>
    %287 = vector.extract_strided_slice %286 {offsets = [0, 0], sizes = [2, 192], strides = [1, 1]} : vector<2x256xf32> to vector<2x192xf32>
    %288 = arith.negf %287 : vector<2x192xf32>
    %289 = math.exp %288 : vector<2x192xf32>
    %cst_86 = arith.constant 1.000000e+00 : f32
    %290 = vector.broadcast %cst_86 : f32 to vector<2x192xf32>
    %291 = arith.addf %290, %289 : vector<2x192xf32>
    %292 = arith.divf %290, %291 : vector<2x192xf32>
    %293 = vector.extract_strided_slice %286 {offsets = [0, 192], sizes = [2, 64], strides = [1, 1]} : vector<2x256xf32> to vector<2x64xf32>
    %294 = math.tanh %293 : vector<2x64xf32>
    %295 = vector.extract_strided_slice %292 {offsets = [0, 0], sizes = [2, 64], strides = [1, 1]} : vector<2x192xf32> to vector<2x64xf32>
    %296 = vector.extract_strided_slice %292 {offsets = [0, 64], sizes = [2, 64], strides = [1, 1]} : vector<2x192xf32> to vector<2x64xf32>
    %297 = vector.extract_strided_slice %292 {offsets = [0, 128], sizes = [2, 64], strides = [1, 1]} : vector<2x192xf32> to vector<2x64xf32>
    %298 = arith.mulf %296, %253 : vector<2x64xf32>
    %299 = arith.mulf %295, %294 : vector<2x64xf32>
    %300 = arith.addf %298, %299 : vector<2x64xf32>
    %301 = math.tanh %300 : vector<2x64xf32>
    %302 = arith.mulf %297, %301 : vector<2x64xf32>
    %cst_87 = arith.constant dense<0.000000e+00> : vector<2x256xf32>
    %303 = tpu.matmul %302, %2, %cst_87 {dimension_numbers = #tpu.dot_dimension_numbers<[1], [0], [0], [1], [0, 0, 1, 1], [], []>} : vector<2x64xf32>, vector<64x256xf32>, vector<2x256xf32> -> vector<2x256xf32>
    %cst_88 = arith.constant dense<0.000000e+00> : vector<2x256xf32>
    %304 = tpu.matmul %275, %3, %cst_88 {dimension_numbers = #tpu.dot_dimension_numbers<[1], [0], [0], [1], [0, 0, 1, 1], [], []>} : vector<2x64xf32>, vector<64x256xf32>, vector<2x256xf32> -> vector<2x256xf32>
    %305 = arith.addf %303, %304 : vector<2x256xf32>
    %306 = arith.addf %305, %7 : vector<2x256xf32>
    %307 = vector.extract_strided_slice %306 {offsets = [0, 0], sizes = [2, 192], strides = [1, 1]} : vector<2x256xf32> to vector<2x192xf32>
    %308 = arith.negf %307 : vector<2x192xf32>
    %309 = math.exp %308 : vector<2x192xf32>
    %cst_89 = arith.constant 1.000000e+00 : f32
    %310 = vector.broadcast %cst_89 : f32 to vector<2x192xf32>
    %311 = arith.addf %310, %309 : vector<2x192xf32>
    %312 = arith.divf %310, %311 : vector<2x192xf32>
    %313 = vector.extract_strided_slice %306 {offsets = [0, 192], sizes = [2, 64], strides = [1, 1]} : vector<2x256xf32> to vector<2x64xf32>
    %314 = math.tanh %313 : vector<2x64xf32>
    %315 = vector.extract_strided_slice %312 {offsets = [0, 0], sizes = [2, 64], strides = [1, 1]} : vector<2x192xf32> to vector<2x64xf32>
    %316 = vector.extract_strided_slice %312 {offsets = [0, 64], sizes = [2, 64], strides = [1, 1]} : vector<2x192xf32> to vector<2x64xf32>
    %317 = vector.extract_strided_slice %312 {offsets = [0, 128], sizes = [2, 64], strides = [1, 1]} : vector<2x192xf32> to vector<2x64xf32>
    %318 = arith.mulf %316, %273 : vector<2x64xf32>
    %319 = arith.mulf %315, %314 : vector<2x64xf32>
    %320 = arith.addf %318, %319 : vector<2x64xf32>
    %321 = math.tanh %320 : vector<2x64xf32>
    %322 = arith.mulf %317, %321 : vector<2x64xf32>
    %cst_90 = arith.constant dense<0.000000e+00> : vector<2x2xf32>
    %323 = tpu.matmul %322, %4, %cst_90 {dimension_numbers = #tpu.dot_dimension_numbers<[1], [0], [0], [1], [0, 0, 1, 1], [], []>} : vector<2x64xf32>, vector<64x2xf32>, vector<2x2xf32> -> vector<2x2xf32>
    %324 = arith.addf %323, %10 : vector<2x2xf32>
    %c6_91 = arith.constant 6 : index
    %c0_92 = arith.constant 0 : index
    %c0_93 = arith.constant 0 : index
    %325 = vector.load %arg8[%c6_91, %c0_92, %c0_93] : memref<8x2x2xf32, #tpu.memory_space<vmem>>, vector<1x2x2xf32>
    %326 = vector.shape_cast %325 : vector<1x2x2xf32> to vector<2x2xf32>
    %327 = vector.shape_cast %324 : vector<2x2xf32> to vector<1x2x2xf32>
    tpu.vector_store %arg8[%c6_91, %c0_92, %c0_93], %327 {strides = array<i32>} : memref<8x2x2xf32, #tpu.memory_space<vmem>>, vector<1x2x2xf32>,
    %c7 = arith.constant 7 : index
    %c0_94 = arith.constant 0 : index
    %c0_95 = arith.constant 0 : index
    %328 = vector.load %arg0[%c7, %c0_94, %c0_95] : memref<8x2x256xf32, #tpu.memory_space<vmem>>, vector<1x2x256xf32>
    %329 = vector.shape_cast %328 : vector<1x2x256xf32> to vector<2x256xf32>
    %cst_96 = arith.constant dense<0.000000e+00> : vector<2x256xf32>
    %330 = tpu.matmul %322, %1, %cst_96 {dimension_numbers = #tpu.dot_dimension_numbers<[1], [0], [0], [1], [0, 0, 1, 1], [], []>} : vector<2x64xf32>, vector<64x256xf32>, vector<2x256xf32> -> vector<2x256xf32>
    %331 = arith.addf %329, %330 : vector<2x256xf32>
    %cst_97 = arith.constant dense<0.000000e+00> : vector<2x256xf32>
    %332 = tpu.matmul %302, %0, %cst_97 {dimension_numbers = #tpu.dot_dimension_numbers<[1], [0], [0], [1], [0, 0, 1, 1], [], []>} : vector<2x64xf32>, vector<64x256xf32>, vector<2x256xf32> -> vector<2x256xf32>
    %333 = arith.addf %331, %332 : vector<2x256xf32>
    %334 = vector.extract_strided_slice %333 {offsets = [0, 0], sizes = [2, 192], strides = [1, 1]} : vector<2x256xf32> to vector<2x192xf32>
    %335 = arith.negf %334 : vector<2x192xf32>
    %336 = math.exp %335 : vector<2x192xf32>
    %cst_98 = arith.constant 1.000000e+00 : f32
    %337 = vector.broadcast %cst_98 : f32 to vector<2x192xf32>
    %338 = arith.addf %337, %336 : vector<2x192xf32>
    %339 = arith.divf %337, %338 : vector<2x192xf32>
    %340 = vector.extract_strided_slice %333 {offsets = [0, 192], sizes = [2, 64], strides = [1, 1]} : vector<2x256xf32> to vector<2x64xf32>
    %341 = math.tanh %340 : vector<2x64xf32>
    %342 = vector.extract_strided_slice %339 {offsets = [0, 0], sizes = [2, 64], strides = [1, 1]} : vector<2x192xf32> to vector<2x64xf32>
    %343 = vector.extract_strided_slice %339 {offsets = [0, 64], sizes = [2, 64], strides = [1, 1]} : vector<2x192xf32> to vector<2x64xf32>
    %344 = vector.extract_strided_slice %339 {offsets = [0, 128], sizes = [2, 64], strides = [1, 1]} : vector<2x192xf32> to vector<2x64xf32>
    %345 = arith.mulf %343, %300 : vector<2x64xf32>
    %346 = arith.mulf %342, %341 : vector<2x64xf32>
    %347 = arith.addf %345, %346 : vector<2x64xf32>
    %348 = math.tanh %347 : vector<2x64xf32>
    %349 = arith.mulf %344, %348 : vector<2x64xf32>
    %cst_99 = arith.constant dense<0.000000e+00> : vector<2x256xf32>
    %350 = tpu.matmul %349, %2, %cst_99 {dimension_numbers = #tpu.dot_dimension_numbers<[1], [0], [0], [1], [0, 0, 1, 1], [], []>} : vector<2x64xf32>, vector<64x256xf32>, vector<2x256xf32> -> vector<2x256xf32>
    %cst_100 = arith.constant dense<0.000000e+00> : vector<2x256xf32>
    %351 = tpu.matmul %322, %3, %cst_100 {dimension_numbers = #tpu.dot_dimension_numbers<[1], [0], [0], [1], [0, 0, 1, 1], [], []>} : vector<2x64xf32>, vector<64x256xf32>, vector<2x256xf32> -> vector<2x256xf32>
    %352 = arith.addf %350, %351 : vector<2x256xf32>
    %353 = arith.addf %352, %7 : vector<2x256xf32>
    %354 = vector.extract_strided_slice %353 {offsets = [0, 0], sizes = [2, 192], strides = [1, 1]} : vector<2x256xf32> to vector<2x192xf32>
    %355 = arith.negf %354 : vector<2x192xf32>
    %356 = math.exp %355 : vector<2x192xf32>
    %cst_101 = arith.constant 1.000000e+00 : f32
    %357 = vector.broadcast %cst_101 : f32 to vector<2x192xf32>
    %358 = arith.addf %357, %356 : vector<2x192xf32>
    %359 = arith.divf %357, %358 : vector<2x192xf32>
    %360 = vector.extract_strided_slice %353 {offsets = [0, 192], sizes = [2, 64], strides = [1, 1]} : vector<2x256xf32> to vector<2x64xf32>
    %361 = math.tanh %360 : vector<2x64xf32>
    %362 = vector.extract_strided_slice %359 {offsets = [0, 0], sizes = [2, 64], strides = [1, 1]} : vector<2x192xf32> to vector<2x64xf32>
    %363 = vector.extract_strided_slice %359 {offsets = [0, 64], sizes = [2, 64], strides = [1, 1]} : vector<2x192xf32> to vector<2x64xf32>
    %364 = vector.extract_strided_slice %359 {offsets = [0, 128], sizes = [2, 64], strides = [1, 1]} : vector<2x192xf32> to vector<2x64xf32>
    %365 = arith.mulf %363, %320 : vector<2x64xf32>
    %366 = arith.mulf %362, %361 : vector<2x64xf32>
    %367 = arith.addf %365, %366 : vector<2x64xf32>
    %368 = math.tanh %367 : vector<2x64xf32>
    %369 = arith.mulf %364, %368 : vector<2x64xf32>
    %cst_102 = arith.constant dense<0.000000e+00> : vector<2x2xf32>
    %370 = tpu.matmul %369, %4, %cst_102 {dimension_numbers = #tpu.dot_dimension_numbers<[1], [0], [0], [1], [0, 0, 1, 1], [], []>} : vector<2x64xf32>, vector<64x2xf32>, vector<2x2xf32> -> vector<2x2xf32>
    %371 = arith.addf %370, %10 : vector<2x2xf32>
    %c7_103 = arith.constant 7 : index
    %c0_104 = arith.constant 0 : index
    %c0_105 = arith.constant 0 : index
    %372 = vector.load %arg8[%c7_103, %c0_104, %c0_105] : memref<8x2x2xf32, #tpu.memory_space<vmem>>, vector<1x2x2xf32>
    %373 = vector.shape_cast %372 : vector<1x2x2xf32> to vector<2x2xf32>
    %374 = vector.shape_cast %371 : vector<2x2xf32> to vector<1x2x2xf32>
    tpu.vector_store %arg8[%c7_103, %c0_104, %c0_105], %374 {strides = array<i32>} : memref<8x2x2xf32, #tpu.memory_space<vmem>>, vector<1x2x2xf32>,
    return
  }
}

</mosaic_0001>

<bundles_post_ra>
// kernel: basic_lstm_forward.1
= control target key start
LH: loop header
LB: loop body
LE: loop exit
PB: predicated region body
PF: predicated region fallthrough
CT: control target
= control target key end

     0   :  { %s4497_s11 = smov 64   ;;  %v4498_v15 = vmov 0.0   ;;  %vm139_vm0 = vcmask 523264   ;;  %v4499_v37 = vmov 0.0|0.0   ;;  %v103_v47 = vlaneseq  ;;  %s5491_s0 = inlined_call_operand.vmem [shape: f32[8,2,256], index: 0, kind: input, shape index: {}]   ;;  %s5492_s3 = inlined_call_operand.vmem [shape: f32[64,256], index: 3, kind: input, shape index: {}]   ;;  %s5493_s2 = inlined_call_operand.vmem [shape: f32[64,256], index: 2, kind: input, shape index: {}]   ;;  %s5494_s6 = inlined_call_operand.vmem [shape: f32[64,2], index: 6, kind: input, shape index: {}]   ;;  %s5495_s5 = inlined_call_operand.vmem [shape: f32[1,256], index: 5, kind: input, shape index: {}]   ;;  %s5496_s1 = inlined_call_operand.vmem [shape: f32[64,256], index: 1, kind: input, shape index: {}]   ;;  %s5497_s4 = inlined_call_operand.vmem [shape: f32[64,256], index: 4, kind: input, shape index: {}]   ;;  %s5498_s7 = inlined_call_operand.vmem [shape: f32[1,2], index: 7, kind: input, shape index: {}]   ;;  %s5499_s8 = inlined_call_operand.vmem [shape: f32[8,2,2], index: 8, kind: output, shape index: {}]  }
   0x1   :  { %v120_v0 = vld [vmem:[%s5491_s0] sm:$0xf]  ;;  %v62_v1 = vld [vmem:[%s5492_s3 + $0x8] sm:$0xff]  ;;  %v64_v2 = vld [vmem:[%s5492_s3 + $0x18] sm:$0xff]  ;;  %207 = vmatprep.mubr.f32.mxu0 %v4498_v15  ;;  %3773 = vmatprep.subr.bf16.mxu1 %v4499_v37  ;;  %vm4500_vm1 = vmmov 0   ;;  %vm307_vm2 = vcmask 9216  }
   0x2   :  { %128 = vrot.lane.b32.xlu0 %v120_v0, %s4497_s11  ;;  %v4557_v3 = vpack.c.bf16 %v64_v2, %v62_v1  ;;  %v61_v4 = vld [vmem:[%s5492_s3] sm:$0xff]  ;;  %v63_v5 = vld [vmem:[%s5492_s3 + $0x10] sm:$0xff]  ;;  %v66_v6 = vld [vmem:[%s5492_s3 + $0x28] sm:$0xff]  ;;  %v3458_v26 = vmul.f32 -1.442695, %v120_v0  ;;  %v4661_v48 = vshrl.u32 %v103_v47, 7  ;;  %3621 = vmatprep.mubr.msk.f32.mxu1 %vm4500_vm1, %v4498_v15 }
   0x3   :  { %v4568_v7 = vpack.c.bf16 %v63_v5, %v61_v4  ;;  %v68_v8 = vld [vmem:[%s5492_s3 + $0x38] sm:$0xff]  ;;  %v65_v9 = vld [vmem:[%s5492_s3 + $0x20] sm:$0xff]  ;;  %v67_v10 = vld [vmem:[%s5492_s3 + $0x30] sm:$0xff] }
   0x4   :  { %3758 = vmatprep.subr.bf16.mxu0 %v4557_v3  ;;  %v4580_v11 = vpack.c.bf16 %v68_v8, %v66_v6  ;;  %v70_v12 = vld [vmem:[%s5492_s3 + $0x48] sm:$0xff]  ;;  %v72_v13 = vld [vmem:[%s5492_s3 + $0x58] sm:$0xff]  ;;  %v4589_v14 = vpack.c.bf16 %v67_v10, %v65_v9  ;;  %v69_v17 = vld [vmem:[%s5492_s3 + $0x40] sm:$0xff]  ;;  %4336 = vpow2.f32 %v3458_v26  ;;  %v109_v49 = vsub.s32 1, %v4661_v48 }
   0x5   :  { %3760 = vmatpush1.bf16.msra.mxu0 %v4568_v7  ;;  %v4593_v16 = vpack.c.bf16 %v72_v13, %v70_v12  ;;  %v71_v18 = vld [vmem:[%s5492_s3 + $0x50] sm:$0xff]  ;;  %v74_v19 = vld [vmem:[%s5492_s3 + $0x68] sm:$0xff]  ;;  %v76_v20 = vld [vmem:[%s5492_s3 + $0x78] sm:$0xff] }
   0x6   :  { %3762 = vmatprep.subr.bf16.mxu0 %v4580_v11  ;;  %v4608_v21 = vpack.c.bf16 %v71_v18, %v69_v17  ;;  %v4611_v22 = vpack.c.bf16 %v76_v20, %v74_v19  ;;  %v73_v23 = vld [vmem:[%s5492_s3 + $0x60] sm:$0xff]  ;;  %v75_v24 = vld [vmem:[%s5492_s3 + $0x70] sm:$0xff]  ;;  %v46_v38 = vld [vmem:[%s5493_s2 + $0x8] sm:$0xff] }
   0x7   :  { %v4620_v25 = vpack.c.bf16 %v75_v24, %v73_v23  ;;  %v48_v39 = vld [vmem:[%s5493_s2 + $0x18] sm:$0xff]  ;;  %v93_v40 = vld [vmem:[%s5494_s6] sm:$0xff]  ;;  %v94_v42 = vld [vmem:[%s5494_s6 + $0x8] sm:$0xff] }
   0x8   :  { %v4642_v41 = vpack.c.bf16 %v48_v39, %v46_v38  ;;  %v45_v43 = vld [vmem:[%s5493_s2] sm:$0xff]  ;;  %v47_v44 = vld [vmem:[%s5493_s2 + $0x10] sm:$0xff]  ;;  %v4653_v45 = vpack.c.bf16 %v94_v42, %v93_v40  ;;  %v50_v54 = vld [vmem:[%s5493_s2 + $0x28] sm:$0xff] }
   0x9   :  { %3764 = vmatpush1.bf16.msra.mxu0 %v4589_v14  ;;  %v4655_v46 = vpack.c.bf16 %v47_v44, %v45_v43  ;;  %v101_v50 = vld [vmem:[%s5495_s5] sm:$0x3]  ;;  %v52_v55 = vld [vmem:[%s5493_s2 + $0x38] sm:$0xff]  ;;  %v95_v58 = vld [vmem:[%s5494_s6 + $0x10] sm:$0xff] }
   0xa   :  { %3766 = vmatprep.subr.bf16.mxu0 %v4593_v16  ;;  %3775 = vmatpush3.bf16.msra.mxu1 %v4653_v45  ;;  %v4667_v51 = vrot.slane %v101_v50, %v109_v49  ;;  %v4676_v57 = vpack.c.bf16 %v52_v55, %v50_v54  ;;  %v96_v59 = vld [vmem:[%s5494_s6 + $0x18] sm:$0xff]  ;;  %v49_v60 = vld [vmem:[%s5493_s2 + $0x20] sm:$0xff]  ;;  %v51_v62 = vld [vmem:[%s5493_s2 + $0x30] sm:$0xff] }
   0xb   :  { %3776 = vmatprep.subr.bf16.mxu1 %v4499_v37  ;;  %v4687_v61 = vpack.c.bf16 %v96_v59, %v95_v58  ;;  %v4693_v63 = vpack.c.bf16 %v51_v62, %v49_v60  ;;  %v54_v0 = vld [vmem:[%s5493_s2 + $0x48] sm:$0xff]  ;;  %v56_v1 = vld [vmem:[%s5493_s2 + $0x58] sm:$0xff]  ;;  %v97_v2 = vld [vmem:[%s5494_s6 + $0x20] sm:$0xff] }
   0xc   :  { %v4705_v4 = vpack.c.bf16 %v56_v1, %v54_v0  ;;  %v98_v5 = vld [vmem:[%s5494_s6 + $0x28] sm:$0xff]  ;;  %v53_v6 = vld [vmem:[%s5493_s2 + $0x40] sm:$0xff]  ;;  %v55_v8 = vld [vmem:[%s5493_s2 + $0x50] sm:$0xff] }
   0xd   :  { %3768 = vmatpush1.bf16.msra.mxu0 %v4608_v21  ;;  %v4720_v9 = vpack.c.bf16 %v98_v5, %v97_v2  ;;  %v4722_v10 = vpack.c.bf16 %v55_v8, %v53_v6  ;;  %v58_v12 = vld [vmem:[%s5493_s2 + $0x68] sm:$0xff]  ;;  %v60_v13 = vld [vmem:[%s5493_s2 + $0x78] sm:$0xff]  ;;  %v99_v17 = vld [vmem:[%s5494_s6 + $0x30] sm:$0xff] }
   0xe   :  { %3770 = vmatprep.subr.bf16.mxu0 %v4611_v22  ;;  %v4337_v27 = vpop.eup %4336  ;;  %3778 = vmatpush3.bf16.msra.mxu1 %v4687_v61  ;;  %v4734_v18 = vpack.c.bf16 %v60_v13, %v58_v12  ;;  %v100_v19 = vld [vmem:[%s5494_s6 + $0x38] sm:$0xff]  ;;  %v57_v20 = vld [vmem:[%s5493_s2 + $0x60] sm:$0xff]  ;;  %v59_v23 = vld [vmem:[%s5493_s2 + $0x70] sm:$0xff] }
   0xf   :  { %v124_v28 = vadd.f32 1.0, %v4337_v27  ;;  %3779 = vmatprep.subr.bf16.mxu1 %v4499_v37  ;;  %v30_v24 = vld [vmem:[%s5496_s1 + $0x8] sm:$0xff]  ;;  %v32_v26 = vld [vmem:[%s5496_s1 + $0x18] sm:$0xff]  ;;  %v79_v58 = vld [vmem:[%s5497_s4 + $0x10] sm:$0xff] }
  0x10   :  { %v78_v27 = vld [vmem:[%s5497_s4 + $0x8] sm:$0xff]  ;;  %v36_v60 = vld [vmem:[%s5496_s1 + $0x38] sm:$0xff]  ;;  %v33_v8 = vld [vmem:[%s5496_s1 + $0x20] sm:$0xff] }
  0x11   :  { %3772 = vmatpush1.bf16.msra.mxu0 %v4620_v25  ;;  %4338 = vrcp.f32 %v124_v28  ;;  %v4755_v28 = vpack.c.bf16 %v100_v19, %v99_v17  ;;  %v34_v59 = vld [vmem:[%s5496_s1 + $0x28] sm:$0xff]  ;;  %v84_v0 = vld [vmem:[%s5497_s4 + $0x38] sm:$0xff]  ;;  %v35_v12 = vld [vmem:[%s5496_s1 + $0x30] sm:$0xff] }
  0x12   :  { %3786 = vmatprep.subr.bf16.mxu0 %v4642_v41  ;;  %3781 = vmatpush3.bf16.msra.mxu1 %v4720_v9  ;;  %v82_v62 = vld [vmem:[%s5497_s4 + $0x28] sm:$0xff]  ;;  %v4815_v17 = vpack.c.bf16 %v36_v60, %v34_v59 }
  0x13   :  { %3782 = vmatprep.subr.bf16.mxu1 %v4499_v37  ;;  %v4817_v19 = vpack.c.bf16 %v84_v0, %v82_v62  ;;  %v43_v62 = vld [vmem:[%s5496_s1 + $0x70] sm:$0xff]  ;;  %v89_v0 = vld [vmem:[%s5497_s4 + $0x60] sm:$0xff] }
  0x16   :  { %3784 = vmatpush3.bf16.msra.mxu1 %v4755_v28 }
  0x1b   :  { %v4339_v31 = vpop.eup %4338 }
  0x1c   :  { %v136_v34 = vrot.slane %v4339_v31, 2 }
  0x74   :  { %v129_v29 = vpop.permute.xlu0 %128 }
  0x75   :  { %v130_v30 = vrot.slane %v129_v29, 2  ;;  %v80_v29 = vld [vmem:[%s5497_s4 + $0x18] sm:$0xff] }
  0x77   :  { %4340 = vtanh.f32 %v130_v30  ;;  %v4762_v30 = vpack.c.bf16 %v59_v23, %v57_v20  ;;  %v81_v20 = vld [vmem:[%s5497_s4 + $0x20] sm:$0xff]  ;;  %v83_v23 = vld [vmem:[%s5497_s4 + $0x30] sm:$0xff] }
  0x81   :  { %v4341_v32 = vpop.eup %4340 }
  0x82   :  { %v4624_v33 = vmul.f32 %v4341_v32, %v4339_v31  ;;  %v4764_v31 = vpack.c.bf16 %v32_v26, %v30_v24  ;;  %v4767_v32 = vpack.c.bf16 %v80_v29, %v78_v27  ;;  %v38_v24 = vld [vmem:[%s5496_s1 + $0x48] sm:$0xff]  ;;  %v40_v26 = vld [vmem:[%s5496_s1 + $0x58] sm:$0xff] }
  0x83   :  { %v86_v27 = vld [vmem:[%s5497_s4 + $0x48] sm:$0xff]  ;;  %v88_v29 = vld [vmem:[%s5497_s4 + $0x58] sm:$0xff] }
  0x84   :  { %4342 = vtanh.f32 %v4624_v33  ;;  %3802 = vmatprep.subr.bf16.mxu1 %v4764_v31 }
  0x8e   :  { %v4343_v35 = vpop.eup %4342 }
  0x8f   :  { %v4627_v36 = vmul.f32 %v4343_v35, %v136_v34  ;;  %v105_v35 = vsub.s32 0, %v4661_v48 }
  0x91   :  { %3459 = vmatmul.mubr.msk.f32.vlgmr.msra.gmra.mrb[0].mxu0 %vm139_vm0, %v4627_v36  ;;  %v4775_v38 = vrot.slane %v101_v50, %v105_v35  ;;  %v29_v50 = vld [vmem:[%s5496_s1] sm:$0xff]  ;;  %v4843_v35 = vpack.c.bf16 %v83_v23, %v81_v20 }
  0x92   :  { %375 = vmatprep.mubr.f32.mxu0 %v4498_v15  ;;  %3788 = vmatpush1.bf16.msra.mxu0 %v4655_v46 }
  0x93   :  { %3790 = vmatprep.subr.bf16.mxu0 %v4676_v57 }
  0x96   :  { %3792 = vmatpush1.bf16.msra.mxu0 %v4693_v63 }
  0x97   :  { %3794 = vmatprep.subr.bf16.mxu0 %v4705_v4 }
  0x9a   :  { %3796 = vmatpush1.bf16.msra.mxu0 %v4722_v10 }
  0x9b   :  { %3798 = vmatprep.subr.bf16.mxu0 %v4734_v18 }
  0x9e   :  { %3800 = vmatpush1.bf16.msra.mxu0 %v4762_v30 }
  0x9f   :  { %3818 = vmatprep.subr.bf16.mxu0 %v4767_v32 }
 0x164   :  { %v209_v52 = vpop.f32.mrb[0].mxu0 }
 0x165   :  { %v211_v53 = vpop.f32.mrb[1].mxu0  ;;  %v210_v39 = vadd.f32 %v209_v52, %v4775_v38  ;;  %v31_v52 = vld [vmem:[%s5496_s1 + $0x10] sm:$0xff] }
 0x166   :  { %v212_v56 = vadd.f32 %v211_v53, %v4667_v51  ;;  %v4805_v5 = vpack.c.bf16 %v31_v52, %v29_v50  ;;  %v92_v50 = vld [vmem:[%s5497_s4 + $0x78] sm:$0xff] }
 0x167   :  { %v3460_v40 = vmul.f32 -1.442695, %v210_v39  ;;  %v37_v39 = vld [vmem:[%s5496_s1 + $0x40] sm:$0xff] }
 0x168   :  { %4344 = vtanh.f32 %v212_v56  ;;  %v3461_v42 = vmul.f32 -1.442695, %v212_v56  ;;  %v77_v56 = vld [vmem:[%s5497_s4] sm:$0xff] }
 0x169   :  { %4346 = vpow2.f32 %v3460_v40  ;;  %v4807_v6 = vpack.c.bf16 %v79_v58, %v77_v56  ;;  %v39_v40 = vld [vmem:[%s5496_s1 + $0x50] sm:$0xff]  ;;  %v41_v58 = vld [vmem:[%s5496_s1 + $0x60] sm:$0xff] }
 0x16a   :  { %4348 = vpow2.f32 %v3461_v42  ;;  %v4853_v42 = vpack.c.bf16 %v40_v26, %v38_v24  ;;  %v4879_v52 = vpack.c.bf16 %v39_v40, %v37_v39 }
 0x172   :  { %v4345_v34 = vpop.eup %4344 }
 0x173   :  { %228 = vrot.lane.b32.xlu0 %v4345_v34, %s4497_s11  ;;  %v4347_v43 = vpop.eup %4346  ;;  %v4841_v34 = vpack.c.bf16 %v35_v12, %v33_v8 }
 0x174   :  { %v220_v44 = vadd.f32 1.0, %v4347_v43  ;;  %v4349_v47 = vpop.eup %4348  ;;  %v4855_v43 = vpack.c.bf16 %v88_v29, %v86_v27  ;;  %v4501_v27 = vmov 1983009808  }
 0x175   :  { %v221_v49 = vadd.f32 1.0, %v4349_v47  ;;  %v87_v47 = vld [vmem:[%s5497_s4 + $0x50] sm:$0xff]  ;;  %v386_v29 = vunpack.c.l.s4 %v4501_v27 }
 0x176   :  { %4350 = vrcp.f32 %v220_v44  ;;  %v85_v44 = vld [vmem:[%s5497_s4 + $0x40] sm:$0xff] }
 0x177   :  { %4352 = vrcp.f32 %v221_v49  ;;  %v42_v49 = vld [vmem:[%s5496_s1 + $0x68] sm:$0xff]  ;;  %v4881_v56 = vpack.c.bf16 %v87_v47, %v85_v44  ;;  %v387_v39 = vunpack.c.0.s8 %v386_v29 }
 0x179   :  { %v4946_v40 = vsub.s32 %v387_v39, %v4661_v48 }
 0x180   :  { %v4351_v53 = vpop.eup %4350 }
 0x181   :  { %v4353_v1 = vpop.eup %4352 }
 0x1e5   :  { %v229_v54 = vpop.permute.xlu0 %228 }
 0x1e6   :  { %v4778_v55 = vmul.f32 %v4351_v53, %v229_v54  ;;  %v44_v53 = vld [vmem:[%s5496_s1 + $0x78] sm:$0xff]  ;;  %v90_v54 = vld [vmem:[%s5497_s4 + $0x68] sm:$0xff] }
 0x1e7   :  { %v4888_v59 = vpack.c.bf16 %v44_v53, %v42_v49  ;;  %v4890_v60 = vpack.c.bf16 %v92_v50, %v90_v54  ;;  %v3463_v53 = vld [vmem:[%s5491_s0 + $0x4] sm:$0xf] }
 0x1e8   :  { %4354 = vtanh.f32 %v4778_v55 }
 0x1f2   :  { %v4355_v2 = vpop.eup %4354 }
 0x1f3   :  { %v233_v13 = vmul.f32 %v4355_v2, %v4353_v1  ;;  %v91_v1 = vld [vmem:[%s5497_s4 + $0x70] sm:$0xff]  ;;  %v4903_v2 = vpack.c.bf16 %v43_v62, %v41_v58 }
 0x1f4   :  { %v4905_v8 = vpack.c.bf16 %v91_v1, %v89_v0 }
 0x1f5   :  { %3622 = vmatmul.mubr.msk.f32.vlgmr.msra.gmra.mrb[0].mxu1 %vm139_vm0, %v233_v13  ;;  %3464 = vmatmul.mubr.msk.f32.vlgmr.msra.gmra.mrb[2].mxu0 %vm139_vm0, %v233_v13 }
 0x1f6   :  { %3804 = vmatpush1.bf16.msra.mxu1 %v4805_v5  ;;  %3820 = vmatpush1.bf16.msra.mxu0 %v4807_v6 }
 0x1f7   :  { %3806 = vmatprep.subr.bf16.mxu1 %v4815_v17  ;;  %3822 = vmatprep.subr.bf16.mxu0 %v4817_v19 }
 0x1f8   :  { %458 = vmatprep.mubr.f32.mxu1 %v4498_v15  ;;  %573 = vmatprep.mubr.f32.mxu0 %v4498_v15 }
 0x1fa   :  { %3808 = vmatpush1.bf16.msra.mxu1 %v4841_v34  ;;  %3824 = vmatpush1.bf16.msra.mxu0 %v4843_v35 }
 0x1fb   :  { %3810 = vmatprep.subr.bf16.mxu1 %v4853_v42  ;;  %3826 = vmatprep.subr.bf16.mxu0 %v4855_v43 }
 0x1fe   :  { %3812 = vmatpush1.bf16.msra.mxu1 %v4879_v52  ;;  %3828 = vmatpush1.bf16.msra.mxu0 %v4881_v56 }
 0x1ff   :  { %3814 = vmatprep.subr.bf16.mxu1 %v4888_v59  ;;  %3830 = vmatprep.subr.bf16.mxu0 %v4890_v60 }
 0x202   :  { %3816 = vmatpush1.bf16.msra.mxu1 %v4903_v2  ;;  %3832 = vmatpush1.bf16.msra.mxu0 %v4905_v8 }
 0x203   :  { %3834 = vmatprep.subr.bf16.mxu0 %v4557_v3  ;;  %3849 = vmatprep.subr.bf16.mxu1 %v4499_v37 }
 0x205   :  { %3465 = vmatmul.mubr.msk.f32.vlgmr.msra.gmra.mrb[2].mxu1 %vm139_vm0, %v4627_v36  ;;  %3467 = vmatmul.mubr.msk.f32.vlgmr.msra.gmra.mrb[4].mxu0 %vm139_vm0, %v233_v13  ;;  %v4938_v36 = vld [vmem:[%s5498_s7] ss:$0 sm:$0xff] }
 0x206   :  { %3836 = vmatpush1.bf16.msra.mxu0 %v4568_v7  ;;  %647 = vmatprep.mubr.f32.mxu0 %v4498_v15 }
 0x207   :  { %3838 = vmatprep.subr.bf16.mxu0 %v4580_v11  ;;  %3851 = vmatpush3.bf16.msra.mxu1 %v4653_v45 }
 0x208   :  { %3852 = vmatprep.subr.bf16.mxu1 %v4499_v37  ;;  %3640 = vmatprep.mubr.msk.f32.mxu1 %vm4500_vm1, %v4498_v15 }
 0x20a   :  { %3840 = vmatpush1.bf16.msra.mxu0 %v4589_v14 }
 0x20b   :  { %3842 = vmatprep.subr.bf16.mxu0 %v4593_v16  ;;  %3854 = vmatpush3.bf16.msra.mxu1 %v4687_v61 }
 0x20c   :  { %3855 = vmatprep.subr.bf16.mxu1 %v4499_v37 }
 0x20e   :  { %3844 = vmatpush1.bf16.msra.mxu0 %v4608_v21 }
 0x20f   :  { %3846 = vmatprep.subr.bf16.mxu0 %v4611_v22  ;;  %3857 = vmatpush3.bf16.msra.mxu1 %v4720_v9 }
 0x210   :  { %3858 = vmatprep.subr.bf16.mxu1 %v4499_v37 }
 0x212   :  { %3848 = vmatpush1.bf16.msra.mxu0 %v4620_v25 }
 0x213   :  { %3878 = vmatprep.subr.bf16.mxu0 %v4764_v31  ;;  %3860 = vmatpush3.bf16.msra.mxu1 %v4755_v28 }
 0x214   :  { %3862 = vmatprep.subr.bf16.mxu1 %v4642_v41 }
 0x2c8   :  { %v303_v12 = vpop.f32.mrb[0].mxu1  ;;  %v377_v13 = vpop.f32.mrb[2].mxu0 }
 0x2c9   :  { %v304_v20 = vadd.f32 %v4938_v36, %v303_v12  ;;  %v3623_v23 = vpop.f32.mrb[1].mxu1  ;;  %v379_v24 = vpop.f32.mrb[3].mxu0 }
 0x2ca   :  { %v384_v26 = vcombine.low %v377_v13, %v379_v24 }
 0x2cb   :  { %308 = vst.msk [vmem:[%s5499_s8] sm:$0x3] %vm307_vm2, %v304_v20 }
 0x2cc   :  { %v391_v44 = vrot.slane %v384_v26, %v4946_v40 }
 0x2ce   :  { %v393_v58 = vadd.f32 %v3463_v53, %v391_v44 }
 0x2d8   :  { %v460_v47 = vpop.f32.mrb[2].mxu1 }
 0x2d9   :  { %v462_v49 = vpop.f32.mrb[3].mxu1 }
 0x2da   :  { %v467_v54 = vcombine.low %v460_v47, %v462_v49 }
 0x2dc   :  { %v474_v50 = vrot.slane %v467_v54, %v4946_v40 }
 0x2de   :  { %v476_v62 = vadd.f32 %v474_v50, %v393_v58 }
 0x2e0   :  { %484 = vrot.lane.b32.xlu1 %v476_v62, %s4497_s11  ;;  %v3466_v48 = vmul.f32 -1.442695, %v476_v62 }
 0x2e2   :  { %4356 = vpow2.f32 %v3466_v48 }
 0x2e4   :  { %490 = vrot.lane.b32.xlu1 %v4624_v33, %s4497_s11 }
 0x2ec   :  { %v4357_v0 = vpop.eup %4356 }
 0x2ed   :  { %v480_v1 = vadd.f32 1.0, %v4357_v0 }
 0x2ef   :  { %4358 = vrcp.f32 %v480_v1 }
 0x2f9   :  { %v4359_v20 = vpop.eup %4358 }
 0x2fa   :  { %v502_v44 = vrot.slane %v4359_v20, 2 }
 0x352   :  { %v485_v12 = vpop.permute.xlu1 %484 }
 0x353   :  { %v486_v13 = vrot.slane %v485_v12, 2 }
 0x355   :  { %4360 = vtanh.f32 %v486_v13 }
 0x356   :  { %v491_v26 = vpop.permute.xlu1 %490 }
 0x357   :  { %v493_v27 = vmul.f32 %v4359_v20, %v491_v26 }
 0x35f   :  { %v4361_v23 = vpop.eup %4360 }
 0x360   :  { %v494_v24 = vmul.f32 %v4361_v23, %v4359_v20 }
 0x362   :  { %496 = vrot.lane.b32.xlu0 %v494_v24, %s4497_s11 }
 0x3d4   :  { %v497_v29 = vpop.permute.xlu0 %496 }
 0x3d5   :  { %v4957_v39 = vadd.f32 %v497_v29, %v493_v27 }
 0x3d7   :  { %4362 = vtanh.f32 %v4957_v39 }
 0x3e1   :  { %v4363_v33 = vpop.eup %4362 }
 0x3e2   :  { %505 = vrot.lane.b32.xlu1 %v4363_v33, %s4497_s11 }
 0x3e6   :  { %670 = vrot.lane.b32.xlu1 %v4778_v55, %s4497_s11 }
 0x454   :  { %v506_v47 = vpop.permute.xlu1 %505 }
 0x455   :  { %v508_v49 = vmul.f32 %v506_v47, %v502_v44 }
 0x457   :  { %3468 = vmatmul.mubr.msk.f32.vlgmr.msra.gmra.mrb[4].mxu0 %vm139_vm0, %v508_v49 }
 0x458   :  { %3880 = vmatpush1.bf16.msra.mxu0 %v4805_v5  ;;  %914 = vmatprep.mubr.f32.mxu0 %v4498_v15  ;;  %v671_v26 = vpop.permute.xlu1 %670 }
 0x459   :  { %3882 = vmatprep.subr.bf16.mxu0 %v4815_v17 }
 0x45c   :  { %3884 = vmatpush1.bf16.msra.mxu0 %v4841_v34 }
 0x45d   :  { %3886 = vmatprep.subr.bf16.mxu0 %v4853_v42 }
 0x460   :  { %3888 = vmatpush1.bf16.msra.mxu0 %v4879_v52 }
 0x461   :  { %3890 = vmatprep.subr.bf16.mxu0 %v4888_v59 }
 0x464   :  { %3892 = vmatpush1.bf16.msra.mxu0 %v4903_v2 }
 0x465   :  { %3925 = vmatprep.subr.bf16.mxu0 %v4499_v37 }
 0x467   :  { %3475 = vmatmul.mubr.msk.f32.vlgmr.msra.gmra.mrb[6].mxu0 %vm139_vm0, %v508_v49 }
 0x468   :  { %3927 = vmatpush3.bf16.msra.mxu0 %v4653_v45  ;;  %3659 = vmatprep.mubr.msk.f32.mxu0 %vm4500_vm1, %v4498_v15 }
 0x469   :  { %3928 = vmatprep.subr.bf16.mxu0 %v4499_v37 }
 0x46c   :  { %3930 = vmatpush3.bf16.msra.mxu0 %v4687_v61 }
 0x46d   :  { %3931 = vmatprep.subr.bf16.mxu0 %v4499_v37 }
 0x470   :  { %3933 = vmatpush3.bf16.msra.mxu0 %v4720_v9 }
 0x471   :  { %3934 = vmatprep.subr.bf16.mxu0 %v4499_v37 }
 0x474   :  { %3936 = vmatpush3.bf16.msra.mxu0 %v4755_v28 }
 0x475   :  { %3938 = vmatprep.subr.bf16.mxu0 %v4642_v41 }
 0x52a   :  { %v649_v55 = vpop.f32.mrb[4].mxu0 }
 0x52b   :  { %v651_v53 = vpop.f32.mrb[5].mxu0  ;;  %v654_v0 = vadd.f32 %v649_v55, %v4775_v38 }
 0x52c   :  { %v655_v54 = vadd.f32 %v651_v53, %v4667_v51 }
 0x52d   :  { %v3469_v1 = vmul.f32 -1.442695, %v654_v0 }
 0x52e   :  { %4364 = vtanh.f32 %v655_v54  ;;  %v3470_v47 = vmul.f32 -1.442695, %v655_v54 }
 0x52f   :  { %4366 = vpow2.f32 %v3469_v1 }
 0x538   :  { %v4365_v50 = vpop.eup %4364 }
 0x539   :  { %675 = vrot.lane.b32.xlu0 %v4365_v50, %s4497_s11  ;;  %v4367_v12 = vpop.eup %4366 }
 0x53a   :  { %v4986_v58 = vpop.f32.mrb[6].mxu0  ;;  %v662_v13 = vadd.f32 1.0, %v4367_v12 }
 0x53b   :  { %v4988_v62 = vpop.f32.mrb[7].mxu0 }
 0x53c   :  { %v923_v48 = vcombine.low %v4986_v58, %v4988_v62  ;;  %4368 = vrcp.f32 %v662_v13 }
 0x546   :  { %v4369_v20 = vpop.eup %4368 }
 0x547   :  { %v673_v27 = vmul.f32 %v4369_v20, %v671_v26 }
 0x5ab   :  { %v676_v23 = vpop.permute.xlu0 %675 }
 0x5ac   :  { %v678_v24 = vmul.f32 %v4369_v20, %v676_v23 }
 0x5ae   :  { %680 = vrot.lane.b32.xlu0 %v678_v24, %s4497_s11  ;;  %v3473_v24 = vld [vmem:[%s5491_s0 + $0x8] sm:$0xf] }
 0x620   :  { %v681_v29 = vpop.permute.xlu0 %680 }
 0x621   :  { %v4994_v33 = vadd.f32 %v681_v29, %v673_v27  ;;  %v930_v27 = vrot.slane %v923_v48, %v4946_v40 }
 0x623   :  { %4370 = vtanh.f32 %v4994_v33 }
 0x624   :  { %4372 = vpow2.f32 %v3470_v47 }
 0x62d   :  { %v4371_v44 = vpop.eup %4370 }
 0x62e   :  { %686 = vrot.lane.b32.xlu1 %v4371_v44, %s4497_s11  ;;  %v4373_v49 = vpop.eup %4372 }
 0x62f   :  { %v663_v55 = vadd.f32 1.0, %v4373_v49 }
 0x631   :  { %4374 = vrcp.f32 %v663_v55 }
 0x63b   :  { %v4375_v53 = vpop.eup %4374 }
 0x6a0   :  { %v687_v50 = vpop.permute.xlu1 %686 }
 0x6a1   :  { %v689_v0 = vmul.f32 %v4375_v53, %v687_v50 }
 0x6a3   :  { %3641 = vmatmul.mubr.msk.f32.vlgmr.msra.gmra.mrb[4].mxu1 %vm139_vm0, %v689_v0 }
 0x6a4   :  { %3864 = vmatpush1.bf16.msra.mxu1 %v4655_v46  ;;  %831 = vmatprep.mubr.f32.mxu1 %v4498_v15 }
 0x6a5   :  { %3866 = vmatprep.subr.bf16.mxu1 %v4676_v57 }
 0x6a8   :  { %3868 = vmatpush1.bf16.msra.mxu1 %v4693_v63 }
 0x6a9   :  { %3870 = vmatprep.subr.bf16.mxu1 %v4705_v4 }
 0x6ac   :  { %3872 = vmatpush1.bf16.msra.mxu1 %v4722_v10 }
 0x6ad   :  { %3874 = vmatprep.subr.bf16.mxu1 %v4734_v18 }
 0x6b0   :  { %3876 = vmatpush1.bf16.msra.mxu1 %v4762_v30 }
 0x6b1   :  { %3894 = vmatprep.subr.bf16.mxu1 %v4767_v32 }
 0x6b3   :  { %3474 = vmatmul.mubr.msk.f32.vlgmr.msra.gmra.mrb[6].mxu1 %vm139_vm0, %v689_v0 }
 0x6b4   :  { %3896 = vmatpush1.bf16.msra.mxu1 %v4807_v6  ;;  %1025 = vmatprep.mubr.f32.mxu1 %v4498_v15 }
 0x6b5   :  { %3898 = vmatprep.subr.bf16.mxu1 %v4817_v19 }
 0x6b8   :  { %3900 = vmatpush1.bf16.msra.mxu1 %v4843_v35 }
 0x6b9   :  { %3902 = vmatprep.subr.bf16.mxu1 %v4855_v43 }
 0x6bc   :  { %3904 = vmatpush1.bf16.msra.mxu1 %v4881_v56 }
 0x6bd   :  { %3906 = vmatprep.subr.bf16.mxu1 %v4890_v60 }
 0x6c0   :  { %3908 = vmatpush1.bf16.msra.mxu1 %v4905_v8 }
 0x6c1   :  { %3910 = vmatprep.subr.bf16.mxu1 %v4557_v3 }
 0x6c3   :  { %3477 = vmatmul.mubr.msk.f32.vlgmr.msra.gmra.mrb[8].mxu1 %vm139_vm0, %v689_v0 }
 0x6c4   :  { %3912 = vmatpush1.bf16.msra.mxu1 %v4568_v7  ;;  %1099 = vmatprep.mubr.f32.mxu1 %v4498_v15 }
 0x6c5   :  { %3914 = vmatprep.subr.bf16.mxu1 %v4580_v11 }
 0x6c8   :  { %3916 = vmatpush1.bf16.msra.mxu1 %v4589_v14 }
 0x6c9   :  { %3918 = vmatprep.subr.bf16.mxu1 %v4593_v16 }
 0x6cc   :  { %3920 = vmatpush1.bf16.msra.mxu1 %v4608_v21 }
 0x6cd   :  { %3922 = vmatprep.subr.bf16.mxu1 %v4611_v22 }
 0x6d0   :  { %3924 = vmatpush1.bf16.msra.mxu1 %v4620_v25 }
 0x6d1   :  { %3954 = vmatprep.subr.bf16.mxu1 %v4764_v31 }
 0x776   :  { %v759_v54 = vpop.f32.mrb[4].mxu1 }
 0x777   :  { %v760_v1 = vadd.f32 %v4938_v36, %v759_v54  ;;  %v3642_v12 = vpop.f32.mrb[5].mxu1 }
 0x779   :  { %3472 = vst.msk [vmem:[%s5499_s8 + $0x2] sm:$0x3] %vm307_vm2, %v760_v1 }
 0x786   :  { %v833_v13 = vpop.f32.mrb[6].mxu1 }
 0x787   :  { %v835_v20 = vpop.f32.mrb[7].mxu1 }
 0x788   :  { %v840_v23 = vcombine.low %v833_v13, %v835_v20 }
 0x78a   :  { %v847_v26 = vrot.slane %v840_v23, %v4946_v40 }
 0x78c   :  { %v849_v29 = vadd.f32 %v3473_v24, %v847_v26 }
 0x78e   :  { %v932_v44 = vadd.f32 %v930_v27, %v849_v29 }
 0x790   :  { %940 = vrot.lane.b32.xlu0 %v932_v44, %s4497_s11  ;;  %v3476_v47 = vmul.f32 -1.442695, %v932_v44 }
 0x792   :  { %4376 = vpow2.f32 %v3476_v47 }
 0x79c   :  { %v4377_v49 = vpop.eup %4376 }
 0x79d   :  { %v936_v55 = vadd.f32 1.0, %v4377_v49 }
 0x79f   :  { %4378 = vrcp.f32 %v936_v55 }
 0x7a9   :  { %v4379_v0 = vpop.eup %4378 }
 0x7aa   :  { %v945_v58 = vmul.f32 %v4379_v0, %v4957_v39  ;;  %v954_v13 = vrot.slane %v4379_v0, 2 }
 0x802   :  { %v941_v53 = vpop.permute.xlu0 %940 }
 0x803   :  { %v942_v50 = vrot.slane %v941_v53, 2 }
 0x805   :  { %4380 = vtanh.f32 %v942_v50 }
 0x80f   :  { %v4381_v54 = vpop.eup %4380 }
 0x810   :  { %v946_v1 = vmul.f32 %v4381_v54, %v4379_v0 }
 0x812   :  { %948 = vrot.lane.b32.xlu1 %v946_v1, %s4497_s11 }
 0x884   :  { %v949_v62 = vpop.permute.xlu1 %948 }
 0x885   :  { %v5044_v48 = vadd.f32 %v949_v62, %v945_v58 }
 0x887   :  { %4382 = vtanh.f32 %v5044_v48 }
 0x891   :  { %v4383_v12 = vpop.eup %4382 }
 0x892   :  { %957 = vrot.lane.b32.xlu0 %v4383_v12, %s4497_s11 }
 0x904   :  { %v958_v20 = vpop.permute.xlu0 %957 }
 0x905   :  { %v960_v23 = vmul.f32 %v958_v20, %v954_v13 }
 0x907   :  { %3478 = vmatmul.mubr.msk.f32.vlgmr.msra.gmra.mrb[8].mxu1 %vm139_vm0, %v960_v23 }
 0x908   :  { %3956 = vmatpush1.bf16.msra.mxu1 %v4805_v5  ;;  %1362 = vmatprep.mubr.f32.mxu1 %v4498_v15 }
 0x909   :  { %3958 = vmatprep.subr.bf16.mxu1 %v4815_v17 }
 0x90c   :  { %3960 = vmatpush1.bf16.msra.mxu1 %v4841_v34 }
 0x90d   :  { %3962 = vmatprep.subr.bf16.mxu1 %v4853_v42 }
 0x910   :  { %3964 = vmatpush1.bf16.msra.mxu1 %v4879_v52 }
 0x911   :  { %3966 = vmatprep.subr.bf16.mxu1 %v4888_v59 }
 0x914   :  { %3968 = vmatpush1.bf16.msra.mxu1 %v4903_v2 }
 0x915   :  { %4001 = vmatprep.subr.bf16.mxu1 %v4499_v37 }
 0x917   :  { %3485 = vmatmul.mubr.msk.f32.vlgmr.msra.gmra.mrb[10].mxu1 %vm139_vm0, %v960_v23 }
 0x918   :  { %4003 = vmatpush3.bf16.msra.mxu1 %v4653_v45  ;;  %3678 = vmatprep.mubr.msk.f32.mxu1 %vm4500_vm1, %v4498_v15 }
 0x919   :  { %4004 = vmatprep.subr.bf16.mxu1 %v4499_v37 }
 0x91c   :  { %4006 = vmatpush3.bf16.msra.mxu1 %v4687_v61 }
 0x91d   :  { %4007 = vmatprep.subr.bf16.mxu1 %v4499_v37 }
 0x920   :  { %4009 = vmatpush3.bf16.msra.mxu1 %v4720_v9 }
 0x921   :  { %4010 = vmatprep.subr.bf16.mxu1 %v4499_v37 }
 0x924   :  { %4012 = vmatpush3.bf16.msra.mxu1 %v4755_v28 }
 0x925   :  { %4014 = vmatprep.subr.bf16.mxu1 %v4642_v41 }
 0x9da   :  { %v1101_v39 = vpop.f32.mrb[8].mxu1 }
 0x9db   :  { %v1103_v24 = vpop.f32.mrb[9].mxu1  ;;  %v1106_v49 = vadd.f32 %v1101_v39, %v4775_v38 }
 0x9dc   :  { %v1107_v26 = vadd.f32 %v1103_v24, %v4667_v51 }
 0x9dd   :  { %v3479_v55 = vmul.f32 -1.442695, %v1106_v49 }
 0x9de   :  { %4384 = vtanh.f32 %v1107_v26  ;;  %v3480_v20 = vmul.f32 -1.442695, %v1107_v26 }
 0x9df   :  { %4386 = vpow2.f32 %v3479_v55 }
 0x9e8   :  { %v4385_v27 = vpop.eup %4384 }
 0x9e9   :  { %1123 = vrot.lane.b32.xlu1 %v4385_v27, %s4497_s11  ;;  %v4387_v53 = vpop.eup %4386 }
 0x9ea   :  { %v5071_v29 = vpop.f32.mrb[10].mxu1  ;;  %v1114_v50 = vadd.f32 1.0, %v4387_v53 }
 0x9eb   :  { %v5073_v44 = vpop.f32.mrb[11].mxu1 }
 0x9ec   :  { %v1371_v47 = vcombine.low %v5071_v29, %v5073_v44  ;;  %4388 = vrcp.f32 %v1114_v50 }
 0x9f6   :  { %v4389_v0 = vpop.eup %4388 }
 0x9f7   :  { %v1121_v58 = vmul.f32 %v4389_v0, %v4994_v33 }
 0xa5b   :  { %v1124_v54 = vpop.permute.xlu1 %1123 }
 0xa5c   :  { %v1126_v1 = vmul.f32 %v4389_v0, %v1124_v54  ;;  %v3483_v54 = vld [vmem:[%s5491_s0 + $0xc] sm:$0xf] }
 0xa5e   :  { %1128 = vrot.lane.b32.xlu0 %v1126_v1, %s4497_s11 }
 0xad0   :  { %v1129_v62 = vpop.permute.xlu0 %1128 }
 0xad1   :  { %v5080_v12 = vadd.f32 %v1129_v62, %v1121_v58  ;;  %v1378_v58 = vrot.slane %v1371_v47, %v4946_v40 }
 0xad3   :  { %4390 = vtanh.f32 %v5080_v12 }
 0xad4   :  { %4392 = vpow2.f32 %v3480_v20 }
 0xadd   :  { %v4391_v13 = vpop.eup %4390 }
 0xade   :  { %1134 = vrot.lane.b32.xlu1 %v4391_v13, %s4497_s11  ;;  %v4393_v23 = vpop.eup %4392 }
 0xadf   :  { %v1115_v39 = vadd.f32 1.0, %v4393_v23 }
 0xae1   :  { %4394 = vrcp.f32 %v1115_v39 }
 0xaeb   :  { %v4395_v24 = vpop.eup %4394 }
 0xb50   :  { %v1135_v27 = vpop.permute.xlu1 %1134 }
 0xb51   :  { %v1137_v49 = vmul.f32 %v4395_v24, %v1135_v27 }
 0xb53   :  { %3660 = vmatmul.mubr.msk.f32.vlgmr.msra.gmra.mrb[8].mxu0 %vm139_vm0, %v1137_v49 }
 0xb54   :  { %3940 = vmatpush1.bf16.msra.mxu0 %v4655_v46  ;;  %1279 = vmatprep.mubr.f32.mxu0 %v4498_v15 }
 0xb55   :  { %3942 = vmatprep.subr.bf16.mxu0 %v4676_v57 }
 0xb58   :  { %3944 = vmatpush1.bf16.msra.mxu0 %v4693_v63 }
 0xb59   :  { %3946 = vmatprep.subr.bf16.mxu0 %v4705_v4 }
 0xb5c   :  { %3948 = vmatpush1.bf16.msra.mxu0 %v4722_v10 }
 0xb5d   :  { %3950 = vmatprep.subr.bf16.mxu0 %v4734_v18 }
 0xb60   :  { %3952 = vmatpush1.bf16.msra.mxu0 %v4762_v30 }
 0xb61   :  { %3970 = vmatprep.subr.bf16.mxu0 %v4767_v32 }
 0xb63   :  { %3484 = vmatmul.mubr.msk.f32.vlgmr.msra.gmra.mrb[10].mxu0 %vm139_vm0, %v1137_v49 }
 0xb64   :  { %3972 = vmatpush1.bf16.msra.mxu0 %v4807_v6  ;;  %1473 = vmatprep.mubr.f32.mxu0 %v4498_v15 }
 0xb65   :  { %3974 = vmatprep.subr.bf16.mxu0 %v4817_v19 }
 0xb68   :  { %3976 = vmatpush1.bf16.msra.mxu0 %v4843_v35 }
 0xb69   :  { %3978 = vmatprep.subr.bf16.mxu0 %v4855_v43 }
 0xb6c   :  { %3980 = vmatpush1.bf16.msra.mxu0 %v4881_v56 }
 0xb6d   :  { %3982 = vmatprep.subr.bf16.mxu0 %v4890_v60 }
 0xb70   :  { %3984 = vmatpush1.bf16.msra.mxu0 %v4905_v8 }
 0xb71   :  { %3986 = vmatprep.subr.bf16.mxu0 %v4557_v3 }
 0xb73   :  { %3487 = vmatmul.mubr.msk.f32.vlgmr.msra.gmra.mrb[12].mxu0 %vm139_vm0, %v1137_v49 }
 0xb74   :  { %3988 = vmatpush1.bf16.msra.mxu0 %v4568_v7  ;;  %1547 = vmatprep.mubr.f32.mxu0 %v4498_v15 }
 0xb75   :  { %3990 = vmatprep.subr.bf16.mxu0 %v4580_v11 }
 0xb78   :  { %3992 = vmatpush1.bf16.msra.mxu0 %v4589_v14 }
 0xb79   :  { %3994 = vmatprep.subr.bf16.mxu0 %v4593_v16 }
 0xb7c   :  { %3996 = vmatpush1.bf16.msra.mxu0 %v4608_v21 }
 0xb7d   :  { %3998 = vmatprep.subr.bf16.mxu0 %v4611_v22 }
 0xb80   :  { %4000 = vmatpush1.bf16.msra.mxu0 %v4620_v25 }
 0xb81   :  { %4030 = vmatprep.subr.bf16.mxu0 %v4764_v31 }
 0xc26   :  { %v1207_v33 = vpop.f32.mrb[8].mxu0 }
 0xc27   :  { %v1208_v26 = vadd.f32 %v4938_v36, %v1207_v33  ;;  %v3661_v55 = vpop.f32.mrb[9].mxu0 }
 0xc29   :  { %3482 = vst.msk [vmem:[%s5499_s8 + $0x4] sm:$0x3] %vm307_vm2, %v1208_v26 }
 0xc36   :  { %v1281_v53 = vpop.f32.mrb[10].mxu0 }
 0xc37   :  { %v1283_v50 = vpop.f32.mrb[11].mxu0 }
 0xc38   :  { %v1288_v0 = vcombine.low %v1281_v53, %v1283_v50 }
 0xc3a   :  { %v1295_v1 = vrot.slane %v1288_v0, %v4946_v40 }
 0xc3c   :  { %v1297_v62 = vadd.f32 %v3483_v54, %v1295_v1 }
 0xc3e   :  { %v1380_v13 = vadd.f32 %v1378_v58, %v1297_v62 }
 0xc40   :  { %1388 = vrot.lane.b32.xlu0 %v1380_v13, %s4497_s11  ;;  %v3486_v20 = vmul.f32 -1.442695, %v1380_v13 }
 0xc42   :  { %4396 = vpow2.f32 %v3486_v20 }
 0xc4c   :  { %v4397_v23 = vpop.eup %4396 }
 0xc4d   :  { %v1384_v39 = vadd.f32 1.0, %v4397_v23 }
 0xc4f   :  { %4398 = vrcp.f32 %v1384_v39 }
 0xc59   :  { %v4399_v49 = vpop.eup %4398 }
 0xc5a   :  { %v1393_v29 = vmul.f32 %v4399_v49, %v5044_v48  ;;  %v1402_v53 = vrot.slane %v4399_v49, 2 }
 0xcb2   :  { %v1389_v24 = vpop.permute.xlu0 %1388 }
 0xcb3   :  { %v1390_v27 = vrot.slane %v1389_v24, 2 }
 0xcb5   :  { %4400 = vtanh.f32 %v1390_v27 }
 0xcbf   :  { %v4401_v33 = vpop.eup %4400 }
 0xcc0   :  { %v1394_v26 = vmul.f32 %v4401_v33, %v4399_v49 }
 0xcc2   :  { %1396 = vrot.lane.b32.xlu1 %v1394_v26, %s4497_s11 }
 0xd34   :  { %v1397_v44 = vpop.permute.xlu1 %1396 }
 0xd35   :  { %v5130_v47 = vadd.f32 %v1397_v44, %v1393_v29 }
 0xd37   :  { %4402 = vtanh.f32 %v5130_v47 }
 0xd41   :  { %v4403_v55 = vpop.eup %4402 }
 0xd42   :  { %1405 = vrot.lane.b32.xlu0 %v4403_v55, %s4497_s11 }
 0xdb4   :  { %v1406_v50 = vpop.permute.xlu0 %1405 }
 0xdb5   :  { %v1408_v0 = vmul.f32 %v1406_v50, %v1402_v53 }
 0xdb7   :  { %3488 = vmatmul.mubr.msk.f32.vlgmr.msra.gmra.mrb[12].mxu0 %vm139_vm0, %v1408_v0 }
 0xdb8   :  { %4032 = vmatpush1.bf16.msra.mxu0 %v4805_v5  ;;  %1810 = vmatprep.mubr.f32.mxu0 %v4498_v15 }
 0xdb9   :  { %4034 = vmatprep.subr.bf16.mxu0 %v4815_v17 }
 0xdbc   :  { %4036 = vmatpush1.bf16.msra.mxu0 %v4841_v34 }
 0xdbd   :  { %4038 = vmatprep.subr.bf16.mxu0 %v4853_v42 }
 0xdc0   :  { %4040 = vmatpush1.bf16.msra.mxu0 %v4879_v52 }
 0xdc1   :  { %4042 = vmatprep.subr.bf16.mxu0 %v4888_v59 }
 0xdc4   :  { %4044 = vmatpush1.bf16.msra.mxu0 %v4903_v2 }
 0xdc5   :  { %4077 = vmatprep.subr.bf16.mxu0 %v4499_v37 }
 0xdc7   :  { %3495 = vmatmul.mubr.msk.f32.vlgmr.msra.gmra.mrb[14].mxu0 %vm139_vm0, %v1408_v0 }
 0xdc8   :  { %4079 = vmatpush3.bf16.msra.mxu0 %v4653_v45  ;;  %3697 = vmatprep.mubr.msk.f32.mxu0 %vm4500_vm1, %v4498_v15 }
 0xdc9   :  { %4080 = vmatprep.subr.bf16.mxu0 %v4499_v37 }
 0xdcc   :  { %4082 = vmatpush3.bf16.msra.mxu0 %v4687_v61 }
 0xdcd   :  { %4083 = vmatprep.subr.bf16.mxu0 %v4499_v37 }
 0xdd0   :  { %4085 = vmatpush3.bf16.msra.mxu0 %v4720_v9 }
 0xdd1   :  { %4086 = vmatprep.subr.bf16.mxu0 %v4499_v37 }
 0xdd4   :  { %4088 = vmatpush3.bf16.msra.mxu0 %v4755_v28 }
 0xdd5   :  { %4090 = vmatprep.subr.bf16.mxu0 %v4642_v41 }
 0xe8a   :  { %v1549_v48 = vpop.f32.mrb[12].mxu0 }
 0xe8b   :  { %v1551_v54 = vpop.f32.mrb[13].mxu0  ;;  %v1554_v23 = vadd.f32 %v1549_v48, %v4775_v38 }
 0xe8c   :  { %v1555_v1 = vadd.f32 %v1551_v54, %v4667_v51 }
 0xe8d   :  { %v3489_v39 = vmul.f32 -1.442695, %v1554_v23 }
 0xe8e   :  { %4404 = vtanh.f32 %v1555_v1  ;;  %v3490_v50 = vmul.f32 -1.442695, %v1555_v1 }
 0xe8f   :  { %4406 = vpow2.f32 %v3489_v39 }
 0xe98   :  { %v4405_v58 = vpop.eup %4404 }
 0xe99   :  { %1571 = vrot.lane.b32.xlu1 %v4405_v58, %s4497_s11  ;;  %v4407_v24 = vpop.eup %4406 }
 0xe9a   :  { %v5157_v62 = vpop.f32.mrb[14].mxu0  ;;  %v1562_v27 = vadd.f32 1.0, %v4407_v24 }
 0xe9b   :  { %v5159_v13 = vpop.f32.mrb[15].mxu0 }
 0xe9c   :  { %v1819_v20 = vcombine.low %v5157_v62, %v5159_v13  ;;  %4408 = vrcp.f32 %v1562_v27 }
 0xea6   :  { %v4409_v49 = vpop.eup %4408 }
 0xea7   :  { %v1569_v29 = vmul.f32 %v4409_v49, %v5080_v12 }
 0xf0b   :  { %v1572_v33 = vpop.permute.xlu1 %1571 }
 0xf0c   :  { %v1574_v26 = vmul.f32 %v4409_v49, %v1572_v33  ;;  %v3493_v33 = vld [vmem:[%s5491_s0 + $0x10] sm:$0xf] }
 0xf0e   :  { %1576 = vrot.lane.b32.xlu0 %v1574_v26, %s4497_s11 }
 0xf80   :  { %v1577_v44 = vpop.permute.xlu0 %1576 }
 0xf81   :  { %v5166_v55 = vadd.f32 %v1577_v44, %v1569_v29  ;;  %v1826_v29 = vrot.slane %v1819_v20, %v4946_v40 }
 0xf83   :  { %4410 = vtanh.f32 %v5166_v55 }
 0xf84   :  { %4412 = vpow2.f32 %v3490_v50 }
 0xf8d   :  { %v4411_v53 = vpop.eup %4410 }
 0xf8e   :  { %1582 = vrot.lane.b32.xlu1 %v4411_v53, %s4497_s11  ;;  %v4413_v0 = vpop.eup %4412 }
 0xf8f   :  { %v1563_v48 = vadd.f32 1.0, %v4413_v0 }
 0xf91   :  { %4414 = vrcp.f32 %v1563_v48 }
 0xf9b   :  { %v4415_v54 = vpop.eup %4414 }
0x1000   :  { %v1583_v58 = vpop.permute.xlu1 %1582 }
0x1001   :  { %v1585_v23 = vmul.f32 %v4415_v54, %v1583_v58 }
0x1003   :  { %3679 = vmatmul.mubr.msk.f32.vlgmr.msra.gmra.mrb[12].mxu1 %vm139_vm0, %v1585_v23 }
0x1004   :  { %4016 = vmatpush1.bf16.msra.mxu1 %v4655_v46  ;;  %1727 = vmatprep.mubr.f32.mxu1 %v4498_v15 }
0x1005   :  { %4018 = vmatprep.subr.bf16.mxu1 %v4676_v57 }
0x1008   :  { %4020 = vmatpush1.bf16.msra.mxu1 %v4693_v63 }
0x1009   :  { %4022 = vmatprep.subr.bf16.mxu1 %v4705_v4 }
0x100c   :  { %4024 = vmatpush1.bf16.msra.mxu1 %v4722_v10 }
0x100d   :  { %4026 = vmatprep.subr.bf16.mxu1 %v4734_v18 }
0x1010   :  { %4028 = vmatpush1.bf16.msra.mxu1 %v4762_v30 }
0x1011   :  { %4046 = vmatprep.subr.bf16.mxu1 %v4767_v32 }
0x1013   :  { %3494 = vmatmul.mubr.msk.f32.vlgmr.msra.gmra.mrb[14].mxu1 %vm139_vm0, %v1585_v23 }
0x1014   :  { %4048 = vmatpush1.bf16.msra.mxu1 %v4807_v6  ;;  %1921 = vmatprep.mubr.f32.mxu1 %v4498_v15 }
0x1015   :  { %4050 = vmatprep.subr.bf16.mxu1 %v4817_v19 }
0x1018   :  { %4052 = vmatpush1.bf16.msra.mxu1 %v4843_v35 }
0x1019   :  { %4054 = vmatprep.subr.bf16.mxu1 %v4855_v43 }
0x101c   :  { %4056 = vmatpush1.bf16.msra.mxu1 %v4881_v56 }
0x101d   :  { %4058 = vmatprep.subr.bf16.mxu1 %v4890_v60 }
0x1020   :  { %4060 = vmatpush1.bf16.msra.mxu1 %v4905_v8 }
0x1021   :  { %4062 = vmatprep.subr.bf16.mxu1 %v4557_v3 }
0x1023   :  { %3497 = vmatmul.mubr.msk.f32.vlgmr.msra.gmra.mrb[16].mxu1 %vm139_vm0, %v1585_v23 }
0x1024   :  { %4064 = vmatpush1.bf16.msra.mxu1 %v4568_v7  ;;  %1995 = vmatprep.mubr.f32.mxu1 %v4498_v15 }
0x1025   :  { %4066 = vmatprep.subr.bf16.mxu1 %v4580_v11 }
0x1028   :  { %4068 = vmatpush1.bf16.msra.mxu1 %v4589_v14 }
0x1029   :  { %4070 = vmatprep.subr.bf16.mxu1 %v4593_v16 }
0x102c   :  { %4072 = vmatpush1.bf16.msra.mxu1 %v4608_v21 }
0x102d   :  { %4074 = vmatprep.subr.bf16.mxu1 %v4611_v22 }
0x1030   :  { %4076 = vmatpush1.bf16.msra.mxu1 %v4620_v25 }
0x1031   :  { %4106 = vmatprep.subr.bf16.mxu1 %v4764_v31 }
0x10d6   :  { %v1655_v12 = vpop.f32.mrb[12].mxu1 }
0x10d7   :  { %v1656_v1 = vadd.f32 %v4938_v36, %v1655_v12  ;;  %v3680_v39 = vpop.f32.mrb[13].mxu1 }
0x10d9   :  { %3492 = vst.msk [vmem:[%s5499_s8 + $0x6] sm:$0x3] %vm307_vm2, %v1656_v1 }
0x10e6   :  { %v1729_v24 = vpop.f32.mrb[14].mxu1 }
0x10e7   :  { %v1731_v27 = vpop.f32.mrb[15].mxu1 }
0x10e8   :  { %v1736_v49 = vcombine.low %v1729_v24, %v1731_v27 }
0x10ea   :  { %v1743_v26 = vrot.slane %v1736_v49, %v4946_v40 }
0x10ec   :  { %v1745_v44 = vadd.f32 %v3493_v33, %v1743_v26 }
0x10ee   :  { %v1828_v53 = vadd.f32 %v1826_v29, %v1745_v44 }
0x10f0   :  { %1836 = vrot.lane.b32.xlu0 %v1828_v53, %s4497_s11  ;;  %v3496_v50 = vmul.f32 -1.442695, %v1828_v53 }
0x10f2   :  { %4416 = vpow2.f32 %v3496_v50 }
0x10fc   :  { %v4417_v0 = vpop.eup %4416 }
0x10fd   :  { %v1832_v48 = vadd.f32 1.0, %v4417_v0 }
0x10ff   :  { %4418 = vrcp.f32 %v1832_v48 }
0x1109   :  { %v4419_v23 = vpop.eup %4418 }
0x110a   :  { %v1841_v62 = vmul.f32 %v4419_v23, %v5130_v47  ;;  %v1850_v24 = vrot.slane %v4419_v23, 2 }
0x1162   :  { %v1837_v54 = vpop.permute.xlu0 %1836 }
0x1163   :  { %v1838_v58 = vrot.slane %v1837_v54, 2 }
0x1165   :  { %4420 = vtanh.f32 %v1838_v58 }
0x116f   :  { %v4421_v12 = vpop.eup %4420 }
0x1170   :  { %v1842_v1 = vmul.f32 %v4421_v12, %v4419_v23 }
0x1172   :  { %1844 = vrot.lane.b32.xlu1 %v1842_v1, %s4497_s11 }
0x11e4   :  { %v1845_v13 = vpop.permute.xlu1 %1844 }
0x11e5   :  { %v5216_v20 = vadd.f32 %v1845_v13, %v1841_v62 }
0x11e7   :  { %4422 = vtanh.f32 %v5216_v20 }
0x11f1   :  { %v4423_v39 = vpop.eup %4422 }
0x11f2   :  { %1853 = vrot.lane.b32.xlu0 %v4423_v39, %s4497_s11 }
0x1264   :  { %v1854_v27 = vpop.permute.xlu0 %1853 }
0x1265   :  { %v1856_v49 = vmul.f32 %v1854_v27, %v1850_v24 }
0x1267   :  { %3498 = vmatmul.mubr.msk.f32.vlgmr.msra.gmra.mrb[16].mxu1 %vm139_vm0, %v1856_v49 }
0x1268   :  { %4108 = vmatpush1.bf16.msra.mxu1 %v4805_v5  ;;  %2258 = vmatprep.mubr.f32.mxu1 %v4498_v15 }
0x1269   :  { %4110 = vmatprep.subr.bf16.mxu1 %v4815_v17 }
0x126c   :  { %4112 = vmatpush1.bf16.msra.mxu1 %v4841_v34 }
0x126d   :  { %4114 = vmatprep.subr.bf16.mxu1 %v4853_v42 }
0x1270   :  { %4116 = vmatpush1.bf16.msra.mxu1 %v4879_v52 }
0x1271   :  { %4118 = vmatprep.subr.bf16.mxu1 %v4888_v59 }
0x1274   :  { %4120 = vmatpush1.bf16.msra.mxu1 %v4903_v2 }
0x1275   :  { %4153 = vmatprep.subr.bf16.mxu1 %v4499_v37 }
0x1277   :  { %3505 = vmatmul.mubr.msk.f32.vlgmr.msra.gmra.mrb[18].mxu1 %vm139_vm0, %v1856_v49 }
0x1278   :  { %4155 = vmatpush3.bf16.msra.mxu1 %v4653_v45  ;;  %3716 = vmatprep.mubr.msk.f32.mxu1 %vm4500_vm1, %v4498_v15 }
0x1279   :  { %4156 = vmatprep.subr.bf16.mxu1 %v4499_v37 }
0x127c   :  { %4158 = vmatpush3.bf16.msra.mxu1 %v4687_v61 }
0x127d   :  { %4159 = vmatprep.subr.bf16.mxu1 %v4499_v37 }
0x1280   :  { %4161 = vmatpush3.bf16.msra.mxu1 %v4720_v9 }
0x1281   :  { %4162 = vmatprep.subr.bf16.mxu1 %v4499_v37 }
0x1284   :  { %4164 = vmatpush3.bf16.msra.mxu1 %v4755_v28 }
0x1285   :  { %4166 = vmatprep.subr.bf16.mxu1 %v4642_v41 }
0x133a   :  { %v1997_v47 = vpop.f32.mrb[16].mxu1 }
0x133b   :  { %v1999_v33 = vpop.f32.mrb[17].mxu1  ;;  %v2002_v0 = vadd.f32 %v1997_v47, %v4775_v38 }
0x133c   :  { %v2003_v26 = vadd.f32 %v1999_v33, %v4667_v51 }
0x133d   :  { %v3499_v48 = vmul.f32 -1.442695, %v2002_v0 }
0x133e   :  { %4424 = vtanh.f32 %v2003_v26  ;;  %v3500_v27 = vmul.f32 -1.442695, %v2003_v26 }
0x133f   :  { %4426 = vpow2.f32 %v3499_v48 }
0x1348   :  { %v4425_v29 = vpop.eup %4424 }
0x1349   :  { %2019 = vrot.lane.b32.xlu1 %v4425_v29, %s4497_s11  ;;  %v4427_v54 = vpop.eup %4426 }
0x134a   :  { %v5243_v44 = vpop.f32.mrb[18].mxu1  ;;  %v2010_v58 = vadd.f32 1.0, %v4427_v54 }
0x134b   :  { %v5245_v53 = vpop.f32.mrb[19].mxu1 }
0x134c   :  { %v2267_v50 = vcombine.low %v5243_v44, %v5245_v53  ;;  %4428 = vrcp.f32 %v2010_v58 }
0x1356   :  { %v4429_v23 = vpop.eup %4428 }
0x1357   :  { %v2017_v62 = vmul.f32 %v4429_v23, %v5166_v55 }
0x13bb   :  { %v2020_v12 = vpop.permute.xlu1 %2019 }
0x13bc   :  { %v2022_v1 = vmul.f32 %v4429_v23, %v2020_v12  ;;  %v3503_v12 = vld [vmem:[%s5491_s0 + $0x14] sm:$0xf] }
0x13be   :  { %2024 = vrot.lane.b32.xlu0 %v2022_v1, %s4497_s11 }
0x1430   :  { %v2025_v13 = vpop.permute.xlu0 %2024 }
0x1431   :  { %v5252_v39 = vadd.f32 %v2025_v13, %v2017_v62 }
0x1433   :  { %4430 = vtanh.f32 %v5252_v39 }
0x1434   :  { %4432 = vpow2.f32 %v3500_v27 }
0x143d   :  { %v4431_v24 = vpop.eup %4430 }
0x143e   :  { %2030 = vrot.lane.b32.xlu1 %v4431_v24, %s4497_s11  ;;  %v4433_v49 = vpop.eup %4432 }
0x143f   :  { %v2011_v47 = vadd.f32 1.0, %v4433_v49 }
0x1441   :  { %4434 = vrcp.f32 %v2011_v47 }
0x144b   :  { %v4435_v33 = vpop.eup %4434 }
0x14b0   :  { %v2031_v29 = vpop.permute.xlu1 %2030 }
0x14b1   :  { %v2033_v0 = vmul.f32 %v4435_v33, %v2031_v29 }
0x14b3   :  { %3698 = vmatmul.mubr.msk.f32.vlgmr.msra.gmra.mrb[16].mxu0 %vm139_vm0, %v2033_v0 }
0x14b4   :  { %4092 = vmatpush1.bf16.msra.mxu0 %v4655_v46  ;;  %2175 = vmatprep.mubr.f32.mxu0 %v4498_v15 }
0x14b5   :  { %4094 = vmatprep.subr.bf16.mxu0 %v4676_v57 }
0x14b8   :  { %4096 = vmatpush1.bf16.msra.mxu0 %v4693_v63 }
0x14b9   :  { %4098 = vmatprep.subr.bf16.mxu0 %v4705_v4 }
0x14bc   :  { %4100 = vmatpush1.bf16.msra.mxu0 %v4722_v10 }
0x14bd   :  { %4102 = vmatprep.subr.bf16.mxu0 %v4734_v18 }
0x14c0   :  { %4104 = vmatpush1.bf16.msra.mxu0 %v4762_v30 }
0x14c1   :  { %4122 = vmatprep.subr.bf16.mxu0 %v4767_v32 }
0x14c3   :  { %3504 = vmatmul.mubr.msk.f32.vlgmr.msra.gmra.mrb[18].mxu0 %vm139_vm0, %v2033_v0 }
0x14c4   :  { %4124 = vmatpush1.bf16.msra.mxu0 %v4807_v6  ;;  %2369 = vmatprep.mubr.f32.mxu0 %v4498_v15 }
0x14c5   :  { %4126 = vmatprep.subr.bf16.mxu0 %v4817_v19 }
0x14c8   :  { %4128 = vmatpush1.bf16.msra.mxu0 %v4843_v35 }
0x14c9   :  { %4130 = vmatprep.subr.bf16.mxu0 %v4855_v43 }
0x14cc   :  { %4132 = vmatpush1.bf16.msra.mxu0 %v4881_v56 }
0x14cd   :  { %4134 = vmatprep.subr.bf16.mxu0 %v4890_v60 }
0x14d0   :  { %4136 = vmatpush1.bf16.msra.mxu0 %v4905_v8 }
0x14d1   :  { %4138 = vmatprep.subr.bf16.mxu0 %v4557_v3 }
0x14d3   :  { %3507 = vmatmul.mubr.msk.f32.vlgmr.msra.gmra.mrb[20].mxu0 %vm139_vm0, %v2033_v0 }
0x14d4   :  { %4140 = vmatpush1.bf16.msra.mxu0 %v4568_v7  ;;  %2443 = vmatprep.mubr.f32.mxu0 %v4498_v15 }
0x14d5   :  { %4142 = vmatprep.subr.bf16.mxu0 %v4580_v11 }
0x14d8   :  { %4144 = vmatpush1.bf16.msra.mxu0 %v4589_v14 }
0x14d9   :  { %4146 = vmatprep.subr.bf16.mxu0 %v4593_v16 }
0x14dc   :  { %4148 = vmatpush1.bf16.msra.mxu0 %v4608_v21 }
0x14dd   :  { %4150 = vmatprep.subr.bf16.mxu0 %v4611_v22 }
0x14e0   :  { %4152 = vmatpush1.bf16.msra.mxu0 %v4620_v25 }
0x14e1   :  { %4182 = vmatprep.subr.bf16.mxu0 %v4764_v31 }
0x1586   :  { %v2103_v55 = vpop.f32.mrb[16].mxu0 }
0x1587   :  { %v2104_v26 = vadd.f32 %v4938_v36, %v2103_v55  ;;  %v3699_v48 = vpop.f32.mrb[17].mxu0  ;;  %v2274_v36 = vrot.slane %v2267_v50, %v4946_v40 }
0x1589   :  { %3502 = vst.msk [vmem:[%s5499_s8 + $0x8] sm:$0x3] %vm307_vm2, %v2104_v26 }
0x1596   :  { %v2177_v54 = vpop.f32.mrb[18].mxu0 }
0x1597   :  { %v2179_v58 = vpop.f32.mrb[19].mxu0 }
0x1598   :  { %v2184_v23 = vcombine.low %v2177_v54, %v2179_v58 }
0x159a   :  { %v2191_v1 = vrot.slane %v2184_v23, %v4946_v40 }
0x159c   :  { %v2193_v62 = vadd.f32 %v3503_v12, %v2191_v1 }
0x159e   :  { %v2276_v13 = vadd.f32 %v2274_v36, %v2193_v62 }
0x15a0   :  { %2284 = vrot.lane.b32.xlu0 %v2276_v13, %s4497_s11  ;;  %v3506_v24 = vmul.f32 -1.442695, %v2276_v13 }
0x15a2   :  { %4436 = vpow2.f32 %v3506_v24 }
0x15ac   :  { %v4437_v27 = vpop.eup %4436 }
0x15ad   :  { %v2280_v49 = vadd.f32 1.0, %v4437_v27 }
0x15af   :  { %4438 = vrcp.f32 %v2280_v49 }
0x15b9   :  { %v4439_v29 = vpop.eup %4438 }
0x15ba   :  { %v2289_v44 = vmul.f32 %v4439_v29, %v5216_v20  ;;  %v2298_v48 = vrot.slane %v4439_v29, 2 }
0x1612   :  { %v2285_v47 = vpop.permute.xlu0 %2284 }
0x1613   :  { %v2286_v33 = vrot.slane %v2285_v47, 2 }
0x1615   :  { %4440 = vtanh.f32 %v2286_v33 }
0x161f   :  { %v4441_v0 = vpop.eup %4440 }
0x1620   :  { %v2290_v55 = vmul.f32 %v4441_v0, %v4439_v29 }
0x1622   :  { %2292 = vrot.lane.b32.xlu1 %v2290_v55, %s4497_s11 }
0x1694   :  { %v2293_v53 = vpop.permute.xlu1 %2292 }
0x1695   :  { %v5302_v50 = vadd.f32 %v2293_v53, %v2289_v44 }
0x1697   :  { %4442 = vtanh.f32 %v5302_v50 }
0x16a1   :  { %v4443_v26 = vpop.eup %4442 }
0x16a2   :  { %2301 = vrot.lane.b32.xlu0 %v4443_v26, %s4497_s11 }
0x1714   :  { %v2302_v54 = vpop.permute.xlu0 %2301 }
0x1715   :  { %v2304_v58 = vmul.f32 %v2302_v54, %v2298_v48 }
0x1717   :  { %3508 = vmatmul.mubr.msk.f32.vlgmr.msra.gmra.mrb[20].mxu0 %vm139_vm0, %v2304_v58 }
0x1718   :  { %4184 = vmatpush1.bf16.msra.mxu0 %v4805_v5  ;;  %2706 = vmatprep.mubr.f32.mxu0 %v4498_v15 }
0x1719   :  { %4186 = vmatprep.subr.bf16.mxu0 %v4815_v17 }
0x171c   :  { %4188 = vmatpush1.bf16.msra.mxu0 %v4841_v34 }
0x171d   :  { %4190 = vmatprep.subr.bf16.mxu0 %v4853_v42 }
0x1720   :  { %4192 = vmatpush1.bf16.msra.mxu0 %v4879_v52 }
0x1721   :  { %4194 = vmatprep.subr.bf16.mxu0 %v4888_v59 }
0x1724   :  { %4196 = vmatpush1.bf16.msra.mxu0 %v4903_v2 }
0x1725   :  { %4229 = vmatprep.subr.bf16.mxu0 %v4499_v37 }
0x1727   :  { %3515 = vmatmul.mubr.msk.f32.vlgmr.msra.gmra.mrb[22].mxu0 %vm139_vm0, %v2304_v58 }
0x1728   :  { %4231 = vmatpush3.bf16.msra.mxu0 %v4653_v45  ;;  %3735 = vmatprep.mubr.msk.f32.mxu0 %vm4500_vm1, %v4498_v15 }
0x1729   :  { %4232 = vmatprep.subr.bf16.mxu0 %v4499_v37 }
0x172c   :  { %4234 = vmatpush3.bf16.msra.mxu0 %v4687_v61 }
0x172d   :  { %4235 = vmatprep.subr.bf16.mxu0 %v4499_v37 }
0x1730   :  { %4237 = vmatpush3.bf16.msra.mxu0 %v4720_v9 }
0x1731   :  { %4238 = vmatprep.subr.bf16.mxu0 %v4499_v37 }
0x1734   :  { %4240 = vmatpush3.bf16.msra.mxu0 %v4755_v28 }
0x1735   :  { %4242 = vmatprep.subr.bf16.mxu0 %v4642_v41 }
0x17ea   :  { %v2445_v20 = vpop.f32.mrb[20].mxu0 }
0x17eb   :  { %v2447_v23 = vpop.f32.mrb[21].mxu0  ;;  %v2450_v24 = vadd.f32 %v2445_v20, %v4775_v38 }
0x17ec   :  { %v2451_v12 = vadd.f32 %v2447_v23, %v4667_v51 }
0x17ed   :  { %v3509_v27 = vmul.f32 -1.442695, %v2450_v24 }
0x17ee   :  { %4444 = vtanh.f32 %v2451_v12  ;;  %v3510_v26 = vmul.f32 -1.442695, %v2451_v12  ;;  %v5375_v12 = vld [vmem:[%s5498_s7] ss:$0 sm:$0xff] }
0x17ef   :  { %4446 = vpow2.f32 %v3509_v27 }
0x17f8   :  { %v4445_v1 = vpop.eup %4444 }
0x17f9   :  { %2467 = vrot.lane.b32.xlu1 %v4445_v1, %s4497_s11  ;;  %v4447_v41 = vpop.eup %4446 }
0x17fa   :  { %v5329_v36 = vpop.f32.mrb[22].mxu0  ;;  %v2458_v49 = vadd.f32 1.0, %v4447_v41 }
0x17fb   :  { %v5331_v62 = vpop.f32.mrb[23].mxu0 }
0x17fc   :  { %v2715_v13 = vcombine.low %v5329_v36, %v5331_v62  ;;  %4448 = vrcp.f32 %v2458_v49 }
0x1806   :  { %v4449_v47 = vpop.eup %4448 }
0x1807   :  { %v2465_v0 = vmul.f32 %v4449_v47, %v5252_v39 }
0x186b   :  { %v2468_v33 = vpop.permute.xlu1 %2467 }
0x186c   :  { %v2470_v29 = vmul.f32 %v4449_v47, %v2468_v33  ;;  %v2722_v33 = vrot.slane %v2715_v13, %v4946_v40 }
0x186e   :  { %2472 = vrot.lane.b32.xlu0 %v2470_v29, %s4497_s11 }
0x18e0   :  { %v2473_v55 = vpop.permute.xlu0 %2472 }
0x18e1   :  { %v5338_v44 = vadd.f32 %v2473_v55, %v2465_v0 }
0x18e3   :  { %4450 = vtanh.f32 %v5338_v44 }
0x18e4   :  { %4452 = vpow2.f32 %v3510_v26 }
0x18ed   :  { %v4451_v53 = vpop.eup %4450 }
0x18ee   :  { %2478 = vrot.lane.b32.xlu1 %v4451_v53, %s4497_s11  ;;  %v4453_v48 = vpop.eup %4452 }
0x18ef   :  { %v2459_v54 = vadd.f32 1.0, %v4453_v48 }
0x18f1   :  { %4454 = vrcp.f32 %v2459_v54 }
0x18fb   :  { %v4455_v58 = vpop.eup %4454 }
0x1960   :  { %v2479_v20 = vpop.permute.xlu1 %2478 }
0x1961   :  { %v2481_v23 = vmul.f32 %v4455_v58, %v2479_v20 }
0x1963   :  { %3717 = vmatmul.mubr.msk.f32.vlgmr.msra.gmra.mrb[20].mxu1 %vm139_vm0, %v2481_v23 }
0x1964   :  { %4168 = vmatpush1.bf16.msra.mxu1 %v4655_v46  ;;  %2623 = vmatprep.mubr.f32.mxu1 %v4498_v15 }
0x1965   :  { %4170 = vmatprep.subr.bf16.mxu1 %v4676_v57 }
0x1968   :  { %4172 = vmatpush1.bf16.msra.mxu1 %v4693_v63 }
0x1969   :  { %4174 = vmatprep.subr.bf16.mxu1 %v4705_v4 }
0x196c   :  { %4176 = vmatpush1.bf16.msra.mxu1 %v4722_v10 }
0x196d   :  { %4178 = vmatprep.subr.bf16.mxu1 %v4734_v18 }
0x1970   :  { %4180 = vmatpush1.bf16.msra.mxu1 %v4762_v30 }
0x1971   :  { %4198 = vmatprep.subr.bf16.mxu1 %v4767_v32 }
0x1973   :  { %3514 = vmatmul.mubr.msk.f32.vlgmr.msra.gmra.mrb[22].mxu1 %vm139_vm0, %v2481_v23 }
0x1974   :  { %4200 = vmatpush1.bf16.msra.mxu1 %v4807_v6  ;;  %2817 = vmatprep.mubr.f32.mxu1 %v4498_v15 }
0x1975   :  { %4202 = vmatprep.subr.bf16.mxu1 %v4817_v19 }
0x1978   :  { %4204 = vmatpush1.bf16.msra.mxu1 %v4843_v35 }
0x1979   :  { %4206 = vmatprep.subr.bf16.mxu1 %v4855_v43 }
0x197c   :  { %4208 = vmatpush1.bf16.msra.mxu1 %v4881_v56 }
0x197d   :  { %4210 = vmatprep.subr.bf16.mxu1 %v4890_v60 }
0x1980   :  { %4212 = vmatpush1.bf16.msra.mxu1 %v4905_v8 }
0x1981   :  { %4214 = vmatprep.subr.bf16.mxu1 %v4557_v3 }
0x1983   :  { %3517 = vmatmul.mubr.msk.f32.vlgmr.msra.gmra.mrb[24].mxu1 %vm139_vm0, %v2481_v23 }
0x1984   :  { %4216 = vmatpush1.bf16.msra.mxu1 %v4568_v7  ;;  %2891 = vmatprep.mubr.f32.mxu1 %v4498_v15 }
0x1985   :  { %4218 = vmatprep.subr.bf16.mxu1 %v4580_v11 }
0x1988   :  { %4220 = vmatpush1.bf16.msra.mxu1 %v4589_v14 }
0x1989   :  { %4222 = vmatprep.subr.bf16.mxu1 %v4593_v16 }
0x198c   :  { %4224 = vmatpush1.bf16.msra.mxu1 %v4608_v21 }
0x198d   :  { %4226 = vmatprep.subr.bf16.mxu1 %v4611_v22 }
0x1990   :  { %4228 = vmatpush1.bf16.msra.mxu1 %v4620_v25 }
0x1991   :  { %4258 = vmatprep.subr.bf16.mxu1 %v4764_v31  ;;  %v3513_v31 = vld [vmem:[%s5491_s0 + $0x18] sm:$0xf] }
0x1a36   :  { %v2551_v39 = vpop.f32.mrb[20].mxu1 }
0x1a37   :  { %v2552_v1 = vadd.f32 %v5375_v12, %v2551_v39  ;;  %v3718_v24 = vpop.f32.mrb[21].mxu1 }
0x1a39   :  { %3512 = vst.msk [vmem:[%s5499_s8 + $0xa] sm:$0x3] %vm307_vm2, %v2552_v1 }
0x1a46   :  { %v2625_v27 = vpop.f32.mrb[22].mxu1 }
0x1a47   :  { %v2627_v41 = vpop.f32.mrb[23].mxu1 }
0x1a48   :  { %v2632_v49 = vcombine.low %v2625_v27, %v2627_v41 }
0x1a4a   :  { %v2639_v47 = vrot.slane %v2632_v49, %v4946_v40 }
0x1a4c   :  { %v2641_v29 = vadd.f32 %v3513_v31, %v2639_v47 }
0x1a4e   :  { %v2724_v0 = vadd.f32 %v2722_v33, %v2641_v29 }
0x1a50   :  { %2732 = vrot.lane.b32.xlu0 %v2724_v0, %s4497_s11  ;;  %v3516_v55 = vmul.f32 -1.442695, %v2724_v0 }
0x1a52   :  { %4456 = vpow2.f32 %v3516_v55 }
0x1a5c   :  { %v4457_v53 = vpop.eup %4456 }
0x1a5d   :  { %v2728_v26 = vadd.f32 1.0, %v4457_v53 }
0x1a5f   :  { %4458 = vrcp.f32 %v2728_v26 }
0x1a69   :  { %v4459_v58 = vpop.eup %4458 }
0x1a6a   :  { %v2737_v36 = vmul.f32 %v4459_v58, %v5302_v50  ;;  %v2746_v1 = vrot.slane %v4459_v58, 2 }
0x1ac2   :  { %v2733_v48 = vpop.permute.xlu0 %2732 }
0x1ac3   :  { %v2734_v54 = vrot.slane %v2733_v48, 2 }
0x1ac5   :  { %4460 = vtanh.f32 %v2734_v54 }
0x1acf   :  { %v4461_v20 = vpop.eup %4460 }
0x1ad0   :  { %v2738_v23 = vmul.f32 %v4461_v20, %v4459_v58 }
0x1ad2   :  { %2740 = vrot.lane.b32.xlu1 %v2738_v23, %s4497_s11 }
0x1b44   :  { %v2741_v62 = vpop.permute.xlu1 %2740 }
0x1b45   :  { %v5393_v13 = vadd.f32 %v2741_v62, %v2737_v36 }
0x1b47   :  { %4462 = vtanh.f32 %v5393_v13 }
0x1b51   :  { %v4463_v39 = vpop.eup %4462 }
0x1b52   :  { %2749 = vrot.lane.b32.xlu0 %v4463_v39, %s4497_s11 }
0x1bc4   :  { %v2750_v24 = vpop.permute.xlu0 %2749 }
0x1bc5   :  { %v2752_v27 = vmul.f32 %v2750_v24, %v2746_v1 }
0x1bc7   :  { %3518 = vmatmul.mubr.msk.f32.vlgmr.msra.gmra.mrb[24].mxu1 %vm139_vm0, %v2752_v27 }
0x1bc8   :  { %4260 = vmatpush1.bf16.msra.mxu1 %v4805_v5  ;;  %3154 = vmatprep.mubr.f32.mxu1 %v4498_v15 }
0x1bc9   :  { %4262 = vmatprep.subr.bf16.mxu1 %v4815_v17 }
0x1bcc   :  { %4264 = vmatpush1.bf16.msra.mxu1 %v4841_v34 }
0x1bcd   :  { %4266 = vmatprep.subr.bf16.mxu1 %v4853_v42 }
0x1bd0   :  { %4268 = vmatpush1.bf16.msra.mxu1 %v4879_v52 }
0x1bd1   :  { %4270 = vmatprep.subr.bf16.mxu1 %v4888_v59 }
0x1bd4   :  { %4272 = vmatpush1.bf16.msra.mxu1 %v4903_v2 }
0x1bd5   :  { %4305 = vmatprep.subr.bf16.mxu1 %v4499_v37 }
0x1bd7   :  { %3525 = vmatmul.mubr.msk.f32.vlgmr.msra.gmra.mrb[26].mxu1 %vm139_vm0, %v2752_v27 }
0x1bd8   :  { %4307 = vmatpush3.bf16.msra.mxu1 %v4653_v45  ;;  %3754 = vmatprep.mubr.msk.f32.mxu1 %vm4500_vm1, %v4498_v15 }
0x1bd9   :  { %4308 = vmatprep.subr.bf16.mxu1 %v4499_v37 }
0x1bdc   :  { %4310 = vmatpush3.bf16.msra.mxu1 %v4687_v61 }
0x1bdd   :  { %4311 = vmatprep.subr.bf16.mxu1 %v4499_v37 }
0x1be0   :  { %4313 = vmatpush3.bf16.msra.mxu1 %v4720_v9 }
0x1be1   :  { %4314 = vmatprep.subr.bf16.mxu1 %v4499_v37 }
0x1be4   :  { %4316 = vmatpush3.bf16.msra.mxu1 %v4755_v28 }
0x1c9a   :  { %v2893_v5 = vpop.f32.mrb[24].mxu1 }
0x1c9b   :  { %v2895_v17 = vpop.f32.mrb[25].mxu1  ;;  %v2898_v9 = vadd.f32 %v2893_v5, %v4775_v38 }
0x1c9c   :  { %v2899_v34 = vadd.f32 %v2895_v17, %v4667_v51 }
0x1c9d   :  { %v3519_v37 = vmul.f32 -1.442695, %v2898_v9 }
0x1c9e   :  { %4464 = vtanh.f32 %v2899_v34  ;;  %v3520_v29 = vmul.f32 -1.442695, %v2899_v34 }
0x1c9f   :  { %4466 = vpow2.f32 %v3519_v37 }
0x1ca8   :  { %v4465_v45 = vpop.eup %4464 }
0x1ca9   :  { %2915 = vrot.lane.b32.xlu1 %v4465_v45, %s4497_s11  ;;  %v4467_v28 = vpop.eup %4466 }
0x1caa   :  { %v5419_v42 = vpop.f32.mrb[26].mxu1  ;;  %v2906_v59 = vadd.f32 1.0, %v4467_v28 }
0x1cab   :  { %v5421_v52 = vpop.f32.mrb[27].mxu1 }
0x1cac   :  { %v3163_v61 = vcombine.low %v5419_v42, %v5421_v52  ;;  %4468 = vrcp.f32 %v2906_v59 }
0x1cb6   :  { %v4469_v2 = vpop.eup %4468 }
0x1cb7   :  { %v2913_v49 = vmul.f32 %v4469_v2, %v5338_v44 }
0x1d1b   :  { %v2916_v50 = vpop.permute.xlu1 %2915 }
0x1d1c   :  { %v2918_v41 = vmul.f32 %v4469_v2, %v2916_v50 }
0x1d1e   :  { %2920 = vrot.lane.b32.xlu0 %v2918_v41, %s4497_s11 }
0x1d90   :  { %v2921_v31 = vpop.permute.xlu0 %2920 }
0x1d91   :  { %v5428_v47 = vadd.f32 %v2921_v31, %v2913_v49 }
0x1d93   :  { %4470 = vtanh.f32 %v5428_v47 }
0x1d94   :  { %4472 = vpow2.f32 %v3520_v29 }
0x1d9d   :  { %v4471_v33 = vpop.eup %4470 }
0x1d9e   :  { %2926 = vrot.lane.b32.xlu1 %v4471_v33, %s4497_s11  ;;  %v4473_v0 = vpop.eup %4472 }
0x1d9f   :  { %v2907_v55 = vadd.f32 1.0, %v4473_v0 }
0x1da1   :  { %4474 = vrcp.f32 %v2907_v55 }
0x1dab   :  { %v4475_v53 = vpop.eup %4474 }
0x1e10   :  { %v2927_v26 = vpop.permute.xlu1 %2926 }
0x1e11   :  { %v2929_v48 = vmul.f32 %v4475_v53, %v2927_v26 }
0x1e13   :  { %3736 = vmatmul.mubr.msk.f32.vlgmr.msra.gmra.mrb[24].mxu0 %vm139_vm0, %v2929_v48 }
0x1e14   :  { %4244 = vmatpush1.bf16.msra.mxu0 %v4655_v46  ;;  %3071 = vmatprep.mubr.f32.mxu0 %v4498_v15 }
0x1e15   :  { %4246 = vmatprep.subr.bf16.mxu0 %v4676_v57 }
0x1e18   :  { %4248 = vmatpush1.bf16.msra.mxu0 %v4693_v63 }
0x1e19   :  { %4250 = vmatprep.subr.bf16.mxu0 %v4705_v4 }
0x1e1c   :  { %4252 = vmatpush1.bf16.msra.mxu0 %v4722_v10 }
0x1e1d   :  { %4254 = vmatprep.subr.bf16.mxu0 %v4734_v18 }
0x1e20   :  { %4256 = vmatpush1.bf16.msra.mxu0 %v4762_v30 }
0x1e21   :  { %4274 = vmatprep.subr.bf16.mxu0 %v4767_v32 }
0x1e23   :  { %3524 = vmatmul.mubr.msk.f32.vlgmr.msra.gmra.mrb[26].mxu0 %vm139_vm0, %v2929_v48 }
0x1e24   :  { %4276 = vmatpush1.bf16.msra.mxu0 %v4807_v6  ;;  %3265 = vmatprep.mubr.f32.mxu0 %v4498_v15 }
0x1e25   :  { %4278 = vmatprep.subr.bf16.mxu0 %v4817_v19 }
0x1e28   :  { %4280 = vmatpush1.bf16.msra.mxu0 %v4843_v35 }
0x1e29   :  { %4282 = vmatprep.subr.bf16.mxu0 %v4855_v43 }
0x1e2c   :  { %4284 = vmatpush1.bf16.msra.mxu0 %v4881_v56 }
0x1e2d   :  { %4286 = vmatprep.subr.bf16.mxu0 %v4890_v60 }
0x1e30   :  { %4288 = vmatpush1.bf16.msra.mxu0 %v4905_v8 }
0x1e31   :  { %4290 = vmatprep.subr.bf16.mxu0 %v4557_v3 }
0x1e33   :  { %3527 = vmatmul.mubr.msk.f32.vlgmr.msra.gmra.mrb[28].mxu0 %vm139_vm0, %v2929_v48 }
0x1e34   :  { %4292 = vmatpush1.bf16.msra.mxu0 %v4568_v7  ;;  %3339 = vmatprep.mubr.f32.mxu0 %v4498_v15  ;;  %v3523_v15 = vld [vmem:[%s5491_s0 + $0x1c] sm:$0xf] }
0x1e35   :  { %4294 = vmatprep.subr.bf16.mxu0 %v4580_v11 }
0x1e38   :  { %4296 = vmatpush1.bf16.msra.mxu0 %v4589_v14 }
0x1e39   :  { %4298 = vmatprep.subr.bf16.mxu0 %v4593_v16 }
0x1e3c   :  { %4300 = vmatpush1.bf16.msra.mxu0 %v4608_v21  ;;  %v3170_v21 = vrot.slane %v3163_v61, %v4946_v40 }
0x1e3d   :  { %4302 = vmatprep.subr.bf16.mxu0 %v4611_v22 }
0x1e40   :  { %4304 = vmatpush1.bf16.msra.mxu0 %v4620_v25 }
0x1ee6   :  { %v2999_v46 = vpop.f32.mrb[24].mxu0 }
0x1ee7   :  { %v3000_v3 = vadd.f32 %v5375_v12, %v2999_v46  ;;  %v3737_v57 = vpop.f32.mrb[25].mxu0 }
0x1ee9   :  { %3522 = vst.msk [vmem:[%s5499_s8 + $0xc] sm:$0x3] %vm307_vm2, %v3000_v3 }
0x1ef6   :  { %v3073_v7 = vpop.f32.mrb[26].mxu0 }
0x1ef7   :  { %v3075_v11 = vpop.f32.mrb[27].mxu0 }
0x1ef8   :  { %v3080_v14 = vcombine.low %v3073_v7, %v3075_v11 }
0x1efa   :  { %v3087_v16 = vrot.slane %v3080_v14, %v4946_v40 }
0x1efc   :  { %v3089_v22 = vadd.f32 %v3523_v15, %v3087_v16 }
0x1efe   :  { %v3172_v25 = vadd.f32 %v3170_v21, %v3089_v22 }
0x1f00   :  { %3180 = vrot.lane.b32.xlu0 %v3172_v25, %s4497_s11  ;;  %v3526_v63 = vmul.f32 -1.442695, %v3172_v25 }
0x1f02   :  { %4476 = vpow2.f32 %v3526_v63 }
0x1f0c   :  { %v4477_v4 = vpop.eup %4476 }
0x1f0d   :  { %v3176_v10 = vadd.f32 1.0, %v4477_v4 }
0x1f0f   :  { %4478 = vrcp.f32 %v3176_v10 }
0x1f19   :  { %v4479_v32 = vpop.eup %4478 }
0x1f1a   :  { %v3185_v35 = vmul.f32 %v4479_v32, %v5393_v13  ;;  %v3194_v8 = vrot.slane %v4479_v32, 2 }
0x1f72   :  { %v3181_v18 = vpop.permute.xlu0 %3180 }
0x1f73   :  { %v3182_v30 = vrot.slane %v3181_v18, 2 }
0x1f75   :  { %4480 = vtanh.f32 %v3182_v30 }
0x1f7f   :  { %v4481_v6 = vpop.eup %4480 }
0x1f80   :  { %v3186_v19 = vmul.f32 %v4481_v6, %v4479_v32 }
0x1f82   :  { %3188 = vrot.lane.b32.xlu1 %v3186_v19, %s4497_s11 }
0x1ff4   :  { %v3189_v43 = vpop.permute.xlu1 %3188 }
0x1ff5   :  { %v3191_v56 = vadd.f32 %v3189_v43, %v3185_v35 }
0x1ff7   :  { %4482 = vtanh.f32 %v3191_v56 }
0x2001   :  { %v4483_v60 = vpop.eup %4482 }
0x2002   :  { %3197 = vrot.lane.b32.xlu0 %v4483_v60, %s4497_s11 }
0x2074   :  { %v3198_v40 = vpop.permute.xlu0 %3197 }
0x2075   :  { %v3200_v44 = vmul.f32 %v3198_v40, %v3194_v8 }
0x2077   :  { %3528 = vmatmul.mubr.msk.f32.vlgmr.msra.gmra.mrb[28].mxu0 %vm139_vm0, %v3200_v44 }
0x214a   :  { %v3341_v54 = vpop.f32.mrb[28].mxu0 }
0x214b   :  { %v3343_v58 = vpop.f32.mrb[29].mxu0  ;;  %v3346_v36 = vadd.f32 %v3341_v54, %v4775_v38 }
0x214c   :  { %v3347_v20 = vadd.f32 %v3343_v58, %v4667_v51 }
0x214d   :  { %v3529_v62 = vmul.f32 -1.442695, %v3346_v36 }
0x214e   :  { %4484 = vtanh.f32 %v3347_v20  ;;  %v3530_v45 = vmul.f32 -1.442695, %v3347_v20 }
0x214f   :  { %4486 = vpow2.f32 %v3529_v62 }
0x2158   :  { %v4485_v23 = vpop.eup %4484 }
0x2159   :  { %3363 = vrot.lane.b32.xlu1 %v4485_v23, %s4497_s11  ;;  %v4487_v13 = vpop.eup %4486 }
0x215a   :  { %v3354_v39 = vadd.f32 1.0, %v4487_v13 }
0x215c   :  { %4488 = vrcp.f32 %v3354_v39 }
0x2166   :  { %v4489_v1 = vpop.eup %4488 }
0x2167   :  { %v3361_v5 = vmul.f32 %v4489_v1, %v5428_v47 }
0x21cb   :  { %v3364_v24 = vpop.permute.xlu1 %3363 }
0x21cc   :  { %v3366_v27 = vmul.f32 %v4489_v1, %v3364_v24 }
0x21ce   :  { %3368 = vrot.lane.b32.xlu0 %v3366_v27, %s4497_s11 }
0x2240   :  { %v3369_v17 = vpop.permute.xlu0 %3368 }
0x2241   :  { %v3371_v51 = vadd.f32 %v3369_v17, %v3361_v5 }
0x2243   :  { %4490 = vtanh.f32 %v3371_v51 }
0x2244   :  { %4492 = vpow2.f32 %v3530_v45 }
0x224d   :  { %v4491_v34 = vpop.eup %4490 }
0x224e   :  { %3374 = vrot.lane.b32.xlu1 %v4491_v34, %s4497_s11  ;;  %v4493_v38 = vpop.eup %4492 }
0x224f   :  { %v3355_v42 = vadd.f32 1.0, %v4493_v38 }
0x2251   :  { %4494 = vrcp.f32 %v3355_v42 }
0x225b   :  { %v4495_v52 = vpop.eup %4494 }
0x22c0   :  { %v3375_v61 = vpop.permute.xlu1 %3374 }
0x22c1   :  { %v3377_v9 = vmul.f32 %v4495_v52, %v3375_v61 }
0x22c3   :  { %3755 = vmatmul.mubr.msk.f32.vlgmr.msra.gmra.mrb[28].mxu1 %vm139_vm0, %v3377_v9 }
0x2396   :  { %v3447_v37 = vpop.f32.mrb[28].mxu1 }
0x2397   :  { %v3448_v28 = vadd.f32 %v5375_v12, %v3447_v37  ;;  %v3756_v59 = vpop.f32.mrb[29].mxu1 }
0x2399   :  { %3532 = vst.msk [vmem:[%s5499_s8 + $0xe] sm:$0x3] %vm307_vm2, %v3448_v28 }

</bundles_post_ra>
